<compile_context>
chip_gen: v7x
topology: tpu7x:2x2x1
jax: 0.10.0
libtpu: 0.0.40
codegen_flags: <defaults>
</compile_context>

<pallas_src>
import jax
import jax.numpy as jnp
import numpy as np
from jax import lax
from jax.experimental import pallas as pl
from jax.experimental.pallas import tpu as pltpu


# ----------------------------------------------------------------------------
# Model configuration (synthetic small VGG mirroring the module structure)
#   features_conv : conv3x3+ReLU, conv3x3+ReLU, maxpool2x2, conv3x3+ReLU, conv3x3+ReLU
#   max_pool      : 2x2 / stride 2
#   classifier    : Linear -> ReLU -> (Dropout=identity) -> Linear -> ReLU -> Linear
# ----------------------------------------------------------------------------
FEATURES_CFG = ("conv", "conv", "pool", "conv", "conv")
CONV_CHANNELS = [(3, 8), (8, 8), (8, 16), (16, 16)]
IMG = 16                                   # input spatial size (power of two)
HIDDEN = 64
N_CLASSES = 10
C_LAST = CONV_CHANNELS[-1][1]
SO_FINAL = (IMG // 4) * (IMG // 4)         # pooled spatial positions = 16
FLAT = SO_FINAL * C_LAST                   # classifier input = 256

C_MAX = max(max(c) for c in CONV_CHANNELS)         # 16
K_MAX = 9 * C_MAX                                   # 144
S_MAX = IMG * IMG                                   # 256
BUF_W = S_MAX + 2 * (IMG + 1)                       # 290 (data + two margins)

assert IMG & (IMG - 1) == 0, "edge masks use bitwise-and, IMG must be 2^k"


# ----------------------------------------------------------------------------
# In-kernel building blocks (trace-time helpers on (C, H*W) lane-dense slabs)
# ----------------------------------------------------------------------------
def _store_padded(buf, x, W):
    """Store a (C, W*W) slab into the shared flat-margin buffer.

    Layout on lanes: [W+1 zeros | W*W data (q = h*W + w) | W+1 zeros].
    Any in-bounds 3x3 neighbour of a pixel lands inside the data region and
    any out-of-row neighbour lands in a zero margin, so conv taps and pool
    shifts become *contiguous* lane windows (no strided slices, no reshapes).
    Only the margins are zero-filled, never the whole buffer.
    """
    C, S = x.shape
    m = W + 1
    buf[:C, 0:m] = jnp.zeros((C, m), jnp.float32)
    buf[:C, m + S:m + S + m] = jnp.zeros((C, m), jnp.float32)
    buf[:C, m:m + S] = x
    return m


def _col_edge_masks(S, W):
    """(1, S) masks killing taps whose left/right neighbour wraps image rows."""
    q = lax.broadcasted_iota(jnp.int32, (1, S), 1)
    wq = jnp.bitwise_and(q, W - 1)                       # q % W (W is 2^k)
    m_l = jnp.where(wq > 0, 1.0, 0.0)                    # kill w == 0
    m_r = jnp.where(wq < W - 1, 1.0, 0.0)                # kill w == W-1
    return m_l, m_r


def _conv3x3_relu(x, buf, col, w_ref, b_ref, W):
    """3x3 SAME conv + bias + ReLU on a (Cin, W*W) slab -> (Cout, W*W).

    One im2col matmul: (Cout, 9*Cin) x (9*Cin, W*W).  The 9 taps are
    contiguous lane windows of the margin buffer, full-lane-width stores.
    """
    Cin, S = x.shape
    m0 = _store_padded(buf, x, W)
    m_l, m_r = _col_edge_masks(S, W)
    for dh in range(3):
        for dw in range(3):
            t = dh * 3 + dw
            st = m0 + (dh - 1) * W + (dw - 1)
            v = buf[:Cin, st:st + S]                     # contiguous window
            if dw == 0:
                v = v * m_l
            elif dw == 2:
                v = v * m_r
            col[t * Cin:(t + 1) * Cin, :S] = v
    acc = jnp.dot(w_ref[...], col[:9 * Cin, :S],
                  preferred_element_type=jnp.float32)
    return jnp.maximum(acc + b_ref[...], 0.0)


def _maxpool2x2(x, buf, sel_ref, W):
    """2x2 / stride-2 maxpool of a (C, W*W) slab.

    Two shifted-window lane maxes (+1 lane, +W lanes) followed by an MXU
    matmul with a precomputed 0/1 selection matrix that compacts the valid
    (even-row, even-col) lanes -- no lane gathers, no 5-D transposes.
    """
    C, S = x.shape
    m0 = _store_padded(buf, x, W)
    hm = jnp.maximum(x, buf[:C, m0 + 1:m0 + 1 + S])      # pair adjacent cols
    buf[:C, m0:m0 + S] = hm
    vm = jnp.maximum(hm, buf[:C, m0 + W:m0 + W + S])     # pair adjacent rows
    return jnp.dot(vm, sel_ref[...], preferred_element_type=jnp.float32)


# ----------------------------------------------------------------------------
# The fused VGG kernel (one grid point = one image)
# ----------------------------------------------------------------------------
def _vgg_fused_kernel(x_ref,
                      w1, b1, w2, b2, w3, b3, w4, b4,
                      fw1, fb1, fw2, fb2, fw3, fb3,
                      sel1, sel2w, cmask,
                      logits_ref, act_ref,
                      buf, col):
    H = IMG
    Hh = H // 2

    x = x_ref[0]                                         # (3, H*W), q = h*W+w

    # --- features_conv ------------------------------------------------------
    h = _conv3x3_relu(x, buf, col, w1, b1, H)            # (8, 256)
    h = _conv3x3_relu(h, buf, col, w2, b2, H)            # (8, 256)
    h = _maxpool2x2(h, buf, sel1, H)                     # (8, 64)
    h = _conv3x3_relu(h, buf, col, w3, b3, Hh)           # (16, 64)
    h = _conv3x3_relu(h, buf, col, w4, b4, Hh)           # (16, 64)

    # self.activations (GradCAM feature map), contiguous 2-D slab writeback.
    act_ref[0] = h
    # TODO(synk): activations_hook / register_hook only capture autograd grads.

    # --- self.max_pool + x.view((1,-1)) -------------------------------------
    # sel2w is the pool selection matrix column-tiled C_LAST times and
    # cmask[c, f] = (f // SO_FINAL == c): one matmul + one masked sublane-sum
    # produce the NCHW-ordered (1, FLAT) vector with no flatten loop, no flat
    # scratch round-trip and no lane gathers.
    pr = _maxpool2x2(h, buf, sel2w, Hh)                  # (C_LAST, FLAT)
    flat = jnp.sum(pr * cmask[...], axis=0, keepdims=True)   # (1, FLAT)

    # --- classifier: Linear -> ReLU -> (Dropout = identity) -> Linear -> ReLU -> Linear
    z = jnp.maximum(jnp.dot(flat, fw1[...],
                            preferred_element_type=jnp.float32) + fb1[...], 0.0)
    z = jnp.maximum(jnp.dot(z, fw2[...],
                            preferred_element_type=jnp.float32) + fb2[...], 0.0)
    z = jnp.dot(z, fw3[...], preferred_element_type=jnp.float32) + fb3[...]
    logits_ref[0] = z


# ----------------------------------------------------------------------------
# Host-side parameter init / packing (done once, outside the kernel)
# ----------------------------------------------------------------------------
def init_params(key):
    keys = jax.random.split(key, 2 * len(CONV_CHANNELS) + 6)
    kit = iter(keys)
    convs = []
    for cin, cout in CONV_CHANNELS:
        w = jax.random.normal(next(kit), (3, 3, cin, cout),
                              jnp.float32) * np.sqrt(2.0 / (9 * cin))
        b = jax.random.normal(next(kit), (cout,), jnp.float32) * 0.01
        convs.append((w, b))
    fcs = []
    for fin, fout in [(FLAT, HIDDEN), (HIDDEN, HIDDEN), (HIDDEN, N_CLASSES)]:
        w = jax.random.normal(next(kit), (fin, fout),
                              jnp.float32) * np.sqrt(2.0 / fin)
        b = jax.random.normal(next(kit), (fout,), jnp.float32) * 0.01
        fcs.append((w, b))
    return {"convs": convs, "fcs": fcs}


def pack_params(params):
    """Repack weights once on the host into the kernel's lane-dense layout."""
    packed = []
    for w, b in params["convs"]:                         # HWIO (3,3,Cin,Cout)
        cin, cout = w.shape[2], w.shape[3]
        # row order (dh, dw, cin) matches the im2col row order t*Cin + c
        packed.append(jnp.transpose(w.reshape(9 * cin, cout)))   # (Cout, 9Cin)
        packed.append(b.reshape(cout, 1))
    (w1, b1), (w2, b2), (w3, b3) = params["fcs"]
    # The in-kernel masked flatten already produces PyTorch's NCHW (c, h, w)
    # order, so fc1 needs no row permutation.  (TODO(synk): cast to bf16 for
    # the MXU at real VGG sizes; kept f32 here for tight numerical checks.)
    packed += [w1, b1.reshape(1, -1), w2, b2.reshape(1, -1),
               w3, b3.reshape(1, -1)]
    return packed


def make_pool_constants():
    """Selection / mask constants for the MXU-based pool compaction + flatten."""
    def sel(W):
        Wo = W // 2
        s = np.zeros((W * W, Wo * Wo), np.float32)
        for ho in range(Wo):
            for wo in range(Wo):
                s[2 * ho * W + 2 * wo, ho * Wo + wo] = 1.0
        return s
    sel1 = sel(IMG)                                      # (256, 64)
    sel2 = sel(IMG // 2)                                 # (64, 16)
    sel2w = np.tile(sel2, (1, C_LAST))                   # (64, FLAT) col-tiled
    cmask = (np.arange(FLAT)[None, :] // SO_FINAL
             == np.arange(C_LAST)[:, None]).astype(np.float32)   # (C, FLAT)
    return jnp.asarray(sel1), jnp.asarray(sel2w), jnp.asarray(cmask)


# ----------------------------------------------------------------------------
# Forward pass (mirrors VGG.forward): one pallas_call, batch on a parallel grid
# ----------------------------------------------------------------------------
@jax.jit
def vgg_forward(x_nchw, packed, sel1, sel2w, cmask):
    B, cin0 = x_nchw.shape[0], x_nchw.shape[1]
    S1 = IMG * IMG
    S2 = (IMG // 2) * (IMG // 2)
    # NCHW row-major (h, w) flatten == the kernel's q = h*W + w lane order.
    x_flat = x_nchw.reshape(B, cin0, S1).astype(jnp.float32)

    def _full(a):
        return pl.BlockSpec(a.shape, lambda b: (0,) * a.ndim)

    aux = [sel1, sel2w, cmask]
    in_specs = ([pl.BlockSpec((1, cin0, S1), lambda b: (b, 0, 0))]
                + [_full(p) for p in packed]
                + [_full(a) for a in aux])
    out_shape = (jax.ShapeDtypeStruct((B, 1, N_CLASSES), jnp.float32),
                 jax.ShapeDtypeStruct((B, C_LAST, S2), jnp.float32))
    out_specs = (pl.BlockSpec((1, 1, N_CLASSES), lambda b: (b, 0, 0)),
                 pl.BlockSpec((1, C_LAST, S2), lambda b: (b, 0, 0)))

    logits, acts = pl.pallas_call(
        _vgg_fused_kernel,
        grid=(B,),
        in_specs=in_specs,
        out_specs=out_specs,
        out_shape=out_shape,
        scratch_shapes=[
            pltpu.VMEM((C_MAX, BUF_W), jnp.float32),     # shared margin buffer
            pltpu.VMEM((K_MAX, S_MAX), jnp.float32),     # shared im2col buffer
        ],
        compiler_params=pltpu.CompilerParams(
            dimension_semantics=("parallel",)),          # batch across TCs (v7x)
    )(x_flat, *packed, *aux)

    return (logits.reshape(B, N_CLASSES),
            acts.reshape(B, C_LAST, IMG // 2, IMG // 2))


# ----------------------------------------------------------------------------
# Pure-JAX reference (correctness check)
# ----------------------------------------------------------------------------
def ref_forward(x_nchw, params):
    x = x_nchw.astype(jnp.float32)
    ci = 0
    for layer in FEATURES_CFG:
        if layer == "pool":
            x = lax.reduce_window(x, -jnp.inf, lax.max, (1, 1, 2, 2),
                                  (1, 1, 2, 2), "VALID")
        else:
            w, b = params["convs"][ci]
            ci += 1
            w_oihw = jnp.transpose(w, (3, 2, 0, 1))
            x = lax.conv_general_dilated(
                x, w_oihw, (1, 1), "SAME",
                dimension_numbers=("NCHW", "OIHW", "NCHW"),
                precision=lax.Precision.HIGHEST)
            x = jnp.maximum(x + b[None, :, None, None], 0.0)
    acts = x
    x = lax.reduce_window(x, -jnp.inf, lax.max, (1, 1, 2, 2), (1, 1, 2, 2),
                          "VALID")
    xf = x.reshape(x.shape[0], -1)            # per-sample NCHW flatten
    (w1, b1), (w2, b2), (w3, b3) = params["fcs"]
    h = jnp.maximum(jnp.dot(xf, w1, precision=lax.Precision.HIGHEST) + b1, 0.0)
    h = jnp.maximum(jnp.dot(h, w2, precision=lax.Precision.HIGHEST) + b2, 0.0)
    return jnp.dot(h, w3, precision=lax.Precision.HIGHEST) + b3, acts


# ----------------------------------------------------------------------------
if __name__ == "__main__":
    key = jax.random.PRNGKey(0)
    k_x, k_p = jax.random.split(key)
    B = 2
    x = jax.random.normal(k_x, (B, 3, IMG, IMG), jnp.float32)
    params = init_params(k_p)
    packed = pack_params(params)
    sel1, sel2w, cmask = make_pool_constants()

    logits, acts = vgg_forward(x, packed, sel1, sel2w, cmask)
    logits = jax.block_until_ready(logits)
    acts = jax.block_until_ready(acts)

    ref_logits, ref_acts = ref_forward(x, params)
    ref_logits = jax.block_until_ready(ref_logits)
    np.testing.assert_allclose(np.asarray(logits), np.asarray(ref_logits),
                               rtol=1e-4, atol=1e-4)
    np.testing.assert_allclose(np.asarray(acts), np.asarray(ref_acts),
                               rtol=1e-4, atol=1e-4)
    assert logits.shape == (B, N_CLASSES)
    assert acts.shape == (B, C_LAST, IMG // 2, IMG // 2)

    print("KERNEL_OK")
</pallas_src>

<mosaic_0001>
module attributes {stable_mosaic.version = 11 : i64} {
  func.func @_vgg_fused_kernel(%arg0: i32, %arg1: memref<1x3x256xf32, #tpu.memory_space<vmem>>, %arg2: memref<8x27xf32, #tpu.memory_space<vmem>>, %arg3: memref<8x1xf32, #tpu.memory_space<vmem>>, %arg4: memref<8x72xf32, #tpu.memory_space<vmem>>, %arg5: memref<8x1xf32, #tpu.memory_space<vmem>>, %arg6: memref<16x72xf32, #tpu.memory_space<vmem>>, %arg7: memref<16x1xf32, #tpu.memory_space<vmem>>, %arg8: memref<16x144xf32, #tpu.memory_space<vmem>>, %arg9: memref<16x1xf32, #tpu.memory_space<vmem>>, %arg10: memref<256x64xf32, #tpu.memory_space<vmem>>, %arg11: memref<1x64xf32, #tpu.memory_space<vmem>>, %arg12: memref<64x64xf32, #tpu.memory_space<vmem>>, %arg13: memref<1x64xf32, #tpu.memory_space<vmem>>, %arg14: memref<64x10xf32, #tpu.memory_space<vmem>>, %arg15: memref<1x10xf32, #tpu.memory_space<vmem>>, %arg16: memref<256x64xf32, #tpu.memory_space<vmem>>, %arg17: memref<64x256xf32, #tpu.memory_space<vmem>>, %arg18: memref<16x256xf32, #tpu.memory_space<vmem>>, %arg19: memref<1x1x10xf32, #tpu.memory_space<vmem>>, %arg20: memref<1x16x64xf32, #tpu.memory_space<vmem>>, %arg21: memref<16x290xf32, #tpu.memory_space<vmem>>, %arg22: memref<144x256xf32, #tpu.memory_space<vmem>>) attributes {dimension_semantics = [#tpu.dimension_semantics<parallel>], iteration_bounds = array<i64: 2>, scalar_prefetch = 0 : i64, scratch_operands = 2 : i64, tpu.core_type = #tpu.core_type<tc>, window_params = [{transform_indices = @transform_0, window_bounds = array<i64: 1, 3, 256>}, {pipeline_mode = #tpu.pipeline_mode<synchronous>, transform_indices = @transform_1, window_bounds = array<i64: 8, 27>}, {pipeline_mode = #tpu.pipeline_mode<synchronous>, transform_indices = @transform_2, window_bounds = array<i64: 8, 1>}, {pipeline_mode = #tpu.pipeline_mode<synchronous>, transform_indices = @transform_3, window_bounds = array<i64: 8, 72>}, {pipeline_mode = #tpu.pipeline_mode<synchronous>, transform_indices = @transform_4, window_bounds = array<i64: 8, 1>}, {pipeline_mode = #tpu.pipeline_mode<synchronous>, transform_indices = @transform_5, window_bounds = array<i64: 16, 72>}, {pipeline_mode = #tpu.pipeline_mode<synchronous>, transform_indices = @transform_6, window_bounds = array<i64: 16, 1>}, {pipeline_mode = #tpu.pipeline_mode<synchronous>, transform_indices = @transform_7, window_bounds = array<i64: 16, 144>}, {pipeline_mode = #tpu.pipeline_mode<synchronous>, transform_indices = @transform_8, window_bounds = array<i64: 16, 1>}, {pipeline_mode = #tpu.pipeline_mode<synchronous>, transform_indices = @transform_9, window_bounds = array<i64: 256, 64>}, {pipeline_mode = #tpu.pipeline_mode<synchronous>, transform_indices = @transform_10, window_bounds = array<i64: 1, 64>}, {pipeline_mode = #tpu.pipeline_mode<synchronous>, transform_indices = @transform_11, window_bounds = array<i64: 64, 64>}, {pipeline_mode = #tpu.pipeline_mode<synchronous>, transform_indices = @transform_12, window_bounds = array<i64: 1, 64>}, {pipeline_mode = #tpu.pipeline_mode<synchronous>, transform_indices = @transform_13, window_bounds = array<i64: 64, 10>}, {pipeline_mode = #tpu.pipeline_mode<synchronous>, transform_indices = @transform_14, window_bounds = array<i64: 1, 10>}, {pipeline_mode = #tpu.pipeline_mode<synchronous>, transform_indices = @transform_15, window_bounds = array<i64: 256, 64>}, {pipeline_mode = #tpu.pipeline_mode<synchronous>, transform_indices = @transform_16, window_bounds = array<i64: 64, 256>}, {pipeline_mode = #tpu.pipeline_mode<synchronous>, transform_indices = @transform_17, window_bounds = array<i64: 16, 256>}, {transform_indices = @transform_18, window_bounds = array<i64: 1, 1, 10>}, {transform_indices = @transform_19, window_bounds = array<i64: 1, 16, 64>}]} {
    %c0 = arith.constant 0 : index
    %c0_0 = arith.constant 0 : index
    %c0_1 = arith.constant 0 : index
    %0 = vector.load %arg1[%c0, %c0_0, %c0_1] : memref<1x3x256xf32, #tpu.memory_space<vmem>>, vector<1x3x256xf32>
    %1 = vector.shape_cast %0 : vector<1x3x256xf32> to vector<3x256xf32>
    %cst = arith.constant 0.000000e+00 : f32
    %2 = vector.broadcast %cst : f32 to vector<3x17xf32>
    %c0_2 = arith.constant 0 : index
    %c0_3 = arith.constant 0 : index
    %3 = vector.load %arg21[%c0_2, %c0_3] : memref<16x290xf32, #tpu.memory_space<vmem>>, vector<3x17xf32>
    tpu.vector_store %arg21[%c0_2, %c0_3], %2 {strides = array<i32>} : memref<16x290xf32, #tpu.memory_space<vmem>>, vector<3x17xf32>,
    %cst_4 = arith.constant 0.000000e+00 : f32
    %4 = vector.broadcast %cst_4 : f32 to vector<3x17xf32>
    %c0_5 = arith.constant 0 : index
    %c273 = arith.constant 273 : index
    %5 = vector.load %arg21[%c0_5, %c273] : memref<16x290xf32, #tpu.memory_space<vmem>>, vector<3x17xf32>
    tpu.vector_store %arg21[%c0_5, %c273], %4 {strides = array<i32>} : memref<16x290xf32, #tpu.memory_space<vmem>>, vector<3x17xf32>,
    %c0_6 = arith.constant 0 : index
    %c17 = arith.constant 17 : index
    %6 = vector.load %arg21[%c0_6, %c17] : memref<16x290xf32, #tpu.memory_space<vmem>>, vector<3x256xf32>
    tpu.vector_store %arg21[%c0_6, %c17], %1 {strides = array<i32>} : memref<16x290xf32, #tpu.memory_space<vmem>>, vector<3x256xf32>,
    %7 = tpu.iota {dimensions = array<i32: 1>} : vector<1x256xi32>
    %c15_i32 = arith.constant 15 : i32
    %8 = vector.broadcast %c15_i32 : i32 to vector<1x256xi32>
    %9 = arith.andi %7, %8 : vector<1x256xi32>
    %c0_i32 = arith.constant 0 : i32
    %10 = vector.broadcast %c0_i32 : i32 to vector<1x256xi32>
    %11 = arith.cmpi sgt, %9, %10 : vector<1x256xi32>
    %cst_7 = arith.constant 1.000000e+00 : f32
    %cst_8 = arith.constant 0.000000e+00 : f32
    %12 = vector.broadcast %cst_7 : f32 to vector<1x256xf32>
    %13 = vector.broadcast %cst_8 : f32 to vector<1x256xf32>
    %14 = arith.select %11, %12, %13 : vector<1x256xi1>, vector<1x256xf32>
    %c15_i32_9 = arith.constant 15 : i32
    %15 = vector.broadcast %c15_i32_9 : i32 to vector<1x256xi32>
    %16 = arith.cmpi slt, %9, %15 : vector<1x256xi32>
    %cst_10 = arith.constant 1.000000e+00 : f32
    %cst_11 = arith.constant 0.000000e+00 : f32
    %17 = vector.broadcast %cst_10 : f32 to vector<1x256xf32>
    %18 = vector.broadcast %cst_11 : f32 to vector<1x256xf32>
    %19 = arith.select %16, %17, %18 : vector<1x256xi1>, vector<1x256xf32>
    %c0_12 = arith.constant 0 : index
    %c0_13 = arith.constant 0 : index
    %20 = vector.load %arg21[%c0_12, %c0_13] : memref<16x290xf32, #tpu.memory_space<vmem>>, vector<3x256xf32>
    %21 = vector.broadcast %14 : vector<1x256xf32> to vector<3x256xf32>
    %22 = arith.mulf %20, %21 : vector<3x256xf32>
    %c0_14 = arith.constant 0 : index
    %c0_15 = arith.constant 0 : index
    %23 = vector.load %arg22[%c0_14, %c0_15] : memref<144x256xf32, #tpu.memory_space<vmem>>, vector<3x256xf32>
    tpu.vector_store %arg22[%c0_14, %c0_15], %22 {strides = array<i32>} : memref<144x256xf32, #tpu.memory_space<vmem>>, vector<3x256xf32>,
    %c0_16 = arith.constant 0 : index
    %c1 = arith.constant 1 : index
    %24 = vector.load %arg21[%c0_16, %c1] : memref<16x290xf32, #tpu.memory_space<vmem>>, vector<3x256xf32>
    %c3 = arith.constant 3 : index
    %c0_17 = arith.constant 0 : index
    %25 = vector.load %arg22[%c3, %c0_17] : memref<144x256xf32, #tpu.memory_space<vmem>>, vector<3x256xf32>
    tpu.vector_store %arg22[%c3, %c0_17], %24 {strides = array<i32>} : memref<144x256xf32, #tpu.memory_space<vmem>>, vector<3x256xf32>,
    %c0_18 = arith.constant 0 : index
    %c2 = arith.constant 2 : index
    %26 = vector.load %arg21[%c0_18, %c2] : memref<16x290xf32, #tpu.memory_space<vmem>>, vector<3x256xf32>
    %27 = vector.broadcast %19 : vector<1x256xf32> to vector<3x256xf32>
    %28 = arith.mulf %26, %27 : vector<3x256xf32>
    %c6 = arith.constant 6 : index
    %c0_19 = arith.constant 0 : index
    %29 = vector.load %arg22[%c6, %c0_19] : memref<144x256xf32, #tpu.memory_space<vmem>>, vector<3x256xf32>
    tpu.vector_store %arg22[%c6, %c0_19], %28 {strides = array<i32>} : memref<144x256xf32, #tpu.memory_space<vmem>>, vector<3x256xf32>,
    %c0_20 = arith.constant 0 : index
    %c16 = arith.constant 16 : index
    %30 = vector.load %arg21[%c0_20, %c16] : memref<16x290xf32, #tpu.memory_space<vmem>>, vector<3x256xf32>
    %31 = vector.broadcast %14 : vector<1x256xf32> to vector<3x256xf32>
    %32 = arith.mulf %30, %31 : vector<3x256xf32>
    %c9 = arith.constant 9 : index
    %c0_21 = arith.constant 0 : index
    %33 = vector.load %arg22[%c9, %c0_21] : memref<144x256xf32, #tpu.memory_space<vmem>>, vector<3x256xf32>
    tpu.vector_store %arg22[%c9, %c0_21], %32 {strides = array<i32>} : memref<144x256xf32, #tpu.memory_space<vmem>>, vector<3x256xf32>,
    %c0_22 = arith.constant 0 : index
    %c17_23 = arith.constant 17 : index
    %34 = vector.load %arg21[%c0_22, %c17_23] : memref<16x290xf32, #tpu.memory_space<vmem>>, vector<3x256xf32>
    %c12 = arith.constant 12 : index
    %c0_24 = arith.constant 0 : index
    %35 = vector.load %arg22[%c12, %c0_24] : memref<144x256xf32, #tpu.memory_space<vmem>>, vector<3x256xf32>
    tpu.vector_store %arg22[%c12, %c0_24], %34 {strides = array<i32>} : memref<144x256xf32, #tpu.memory_space<vmem>>, vector<3x256xf32>,
    %c0_25 = arith.constant 0 : index
    %c18 = arith.constant 18 : index
    %36 = vector.load %arg21[%c0_25, %c18] : memref<16x290xf32, #tpu.memory_space<vmem>>, vector<3x256xf32>
    %37 = vector.broadcast %19 : vector<1x256xf32> to vector<3x256xf32>
    %38 = arith.mulf %36, %37 : vector<3x256xf32>
    %c15 = arith.constant 15 : index
    %c0_26 = arith.constant 0 : index
    %39 = vector.load %arg22[%c15, %c0_26] : memref<144x256xf32, #tpu.memory_space<vmem>>, vector<3x256xf32>
    tpu.vector_store %arg22[%c15, %c0_26], %38 {strides = array<i32>} : memref<144x256xf32, #tpu.memory_space<vmem>>, vector<3x256xf32>,
    %c0_27 = arith.constant 0 : index
    %c32 = arith.constant 32 : index
    %40 = vector.load %arg21[%c0_27, %c32] : memref<16x290xf32, #tpu.memory_space<vmem>>, vector<3x256xf32>
    %41 = vector.broadcast %14 : vector<1x256xf32> to vector<3x256xf32>
    %42 = arith.mulf %40, %41 : vector<3x256xf32>
    %c18_28 = arith.constant 18 : index
    %c0_29 = arith.constant 0 : index
    %43 = vector.load %arg22[%c18_28, %c0_29] : memref<144x256xf32, #tpu.memory_space<vmem>>, vector<3x256xf32>
    tpu.vector_store %arg22[%c18_28, %c0_29], %42 {strides = array<i32>} : memref<144x256xf32, #tpu.memory_space<vmem>>, vector<3x256xf32>,
    %c0_30 = arith.constant 0 : index
    %c33 = arith.constant 33 : index
    %44 = vector.load %arg21[%c0_30, %c33] : memref<16x290xf32, #tpu.memory_space<vmem>>, vector<3x256xf32>
    %c21 = arith.constant 21 : index
    %c0_31 = arith.constant 0 : index
    %45 = vector.load %arg22[%c21, %c0_31] : memref<144x256xf32, #tpu.memory_space<vmem>>, vector<3x256xf32>
    tpu.vector_store %arg22[%c21, %c0_31], %44 {strides = array<i32>} : memref<144x256xf32, #tpu.memory_space<vmem>>, vector<3x256xf32>,
    %c0_32 = arith.constant 0 : index
    %c34 = arith.constant 34 : index
    %46 = vector.load %arg21[%c0_32, %c34] : memref<16x290xf32, #tpu.memory_space<vmem>>, vector<3x256xf32>
    %47 = vector.broadcast %19 : vector<1x256xf32> to vector<3x256xf32>
    %48 = arith.mulf %46, %47 : vector<3x256xf32>
    %c24 = arith.constant 24 : index
    %c0_33 = arith.constant 0 : index
    %49 = vector.load %arg22[%c24, %c0_33] : memref<144x256xf32, #tpu.memory_space<vmem>>, vector<3x256xf32>
    tpu.vector_store %arg22[%c24, %c0_33], %48 {strides = array<i32>} : memref<144x256xf32, #tpu.memory_space<vmem>>, vector<3x256xf32>,
    %c0_34 = arith.constant 0 : index
    %c0_35 = arith.constant 0 : index
    %50 = vector.load %arg2[%c0_34, %c0_35] : memref<8x27xf32, #tpu.memory_space<vmem>>, vector<8x27xf32>
    %c0_36 = arith.constant 0 : index
    %c0_37 = arith.constant 0 : index
    %51 = vector.load %arg22[%c0_36, %c0_37] : memref<144x256xf32, #tpu.memory_space<vmem>>, vector<27x256xf32>
    %cst_38 = arith.constant dense<0.000000e+00> : vector<8x256xf32>
    %52 = tpu.matmul %50, %51, %cst_38 {dimension_numbers = #tpu.dot_dimension_numbers<[1], [0], [0], [1], [0, 0, 1, 1], [], []>} : vector<8x27xf32>, vector<27x256xf32>, vector<8x256xf32> -> vector<8x256xf32>
    %c0_39 = arith.constant 0 : index
    %c0_40 = arith.constant 0 : index
    %53 = vector.load %arg3[%c0_39, %c0_40] : memref<8x1xf32, #tpu.memory_space<vmem>>, vector<8x1xf32>
    %54 = vector.broadcast %53 : vector<8x1xf32> to vector<8x256xf32>
    %55 = arith.addf %52, %54 : vector<8x256xf32>
    %cst_41 = arith.constant 0.000000e+00 : f32
    %56 = vector.broadcast %cst_41 : f32 to vector<8x256xf32>
    %57 = arith.maximumf %55, %56 : vector<8x256xf32>
    %cst_42 = arith.constant 0.000000e+00 : f32
    %58 = vector.broadcast %cst_42 : f32 to vector<8x17xf32>
    %c0_43 = arith.constant 0 : index
    %c0_44 = arith.constant 0 : index
    %59 = vector.load %arg21[%c0_43, %c0_44] : memref<16x290xf32, #tpu.memory_space<vmem>>, vector<8x17xf32>
    tpu.vector_store %arg21[%c0_43, %c0_44], %58 {strides = array<i32>} : memref<16x290xf32, #tpu.memory_space<vmem>>, vector<8x17xf32>,
    %cst_45 = arith.constant 0.000000e+00 : f32
    %60 = vector.broadcast %cst_45 : f32 to vector<8x17xf32>
    %c0_46 = arith.constant 0 : index
    %c273_47 = arith.constant 273 : index
    %61 = vector.load %arg21[%c0_46, %c273_47] : memref<16x290xf32, #tpu.memory_space<vmem>>, vector<8x17xf32>
    tpu.vector_store %arg21[%c0_46, %c273_47], %60 {strides = array<i32>} : memref<16x290xf32, #tpu.memory_space<vmem>>, vector<8x17xf32>,
    %c0_48 = arith.constant 0 : index
    %c17_49 = arith.constant 17 : index
    %62 = vector.load %arg21[%c0_48, %c17_49] : memref<16x290xf32, #tpu.memory_space<vmem>>, vector<8x256xf32>
    tpu.vector_store %arg21[%c0_48, %c17_49], %57 {strides = array<i32>} : memref<16x290xf32, #tpu.memory_space<vmem>>, vector<8x256xf32>,
    %63 = tpu.iota {dimensions = array<i32: 1>} : vector<1x256xi32>
    %c15_i32_50 = arith.constant 15 : i32
    %64 = vector.broadcast %c15_i32_50 : i32 to vector<1x256xi32>
    %65 = arith.andi %63, %64 : vector<1x256xi32>
    %c0_i32_51 = arith.constant 0 : i32
    %66 = vector.broadcast %c0_i32_51 : i32 to vector<1x256xi32>
    %67 = arith.cmpi sgt, %65, %66 : vector<1x256xi32>
    %cst_52 = arith.constant 1.000000e+00 : f32
    %cst_53 = arith.constant 0.000000e+00 : f32
    %68 = vector.broadcast %cst_52 : f32 to vector<1x256xf32>
    %69 = vector.broadcast %cst_53 : f32 to vector<1x256xf32>
    %70 = arith.select %67, %68, %69 : vector<1x256xi1>, vector<1x256xf32>
    %c15_i32_54 = arith.constant 15 : i32
    %71 = vector.broadcast %c15_i32_54 : i32 to vector<1x256xi32>
    %72 = arith.cmpi slt, %65, %71 : vector<1x256xi32>
    %cst_55 = arith.constant 1.000000e+00 : f32
    %cst_56 = arith.constant 0.000000e+00 : f32
    %73 = vector.broadcast %cst_55 : f32 to vector<1x256xf32>
    %74 = vector.broadcast %cst_56 : f32 to vector<1x256xf32>
    %75 = arith.select %72, %73, %74 : vector<1x256xi1>, vector<1x256xf32>
    %c0_57 = arith.constant 0 : index
    %c0_58 = arith.constant 0 : index
    %76 = vector.load %arg21[%c0_57, %c0_58] : memref<16x290xf32, #tpu.memory_space<vmem>>, vector<8x256xf32>
    %77 = vector.broadcast %70 : vector<1x256xf32> to vector<8x256xf32>
    %78 = arith.mulf %76, %77 : vector<8x256xf32>
    %c0_59 = arith.constant 0 : index
    %c0_60 = arith.constant 0 : index
    %79 = vector.load %arg22[%c0_59, %c0_60] : memref<144x256xf32, #tpu.memory_space<vmem>>, vector<8x256xf32>
    tpu.vector_store %arg22[%c0_59, %c0_60], %78 {strides = array<i32>} : memref<144x256xf32, #tpu.memory_space<vmem>>, vector<8x256xf32>,
    %c0_61 = arith.constant 0 : index
    %c1_62 = arith.constant 1 : index
    %80 = vector.load %arg21[%c0_61, %c1_62] : memref<16x290xf32, #tpu.memory_space<vmem>>, vector<8x256xf32>
    %c8 = arith.constant 8 : index
    %c0_63 = arith.constant 0 : index
    %81 = vector.load %arg22[%c8, %c0_63] : memref<144x256xf32, #tpu.memory_space<vmem>>, vector<8x256xf32>
    tpu.vector_store %arg22[%c8, %c0_63], %80 {strides = array<i32>} : memref<144x256xf32, #tpu.memory_space<vmem>>, vector<8x256xf32>,
    %c0_64 = arith.constant 0 : index
    %c2_65 = arith.constant 2 : index
    %82 = vector.load %arg21[%c0_64, %c2_65] : memref<16x290xf32, #tpu.memory_space<vmem>>, vector<8x256xf32>
    %83 = vector.broadcast %75 : vector<1x256xf32> to vector<8x256xf32>
    %84 = arith.mulf %82, %83 : vector<8x256xf32>
    %c16_66 = arith.constant 16 : index
    %c0_67 = arith.constant 0 : index
    %85 = vector.load %arg22[%c16_66, %c0_67] : memref<144x256xf32, #tpu.memory_space<vmem>>, vector<8x256xf32>
    tpu.vector_store %arg22[%c16_66, %c0_67], %84 {strides = array<i32>} : memref<144x256xf32, #tpu.memory_space<vmem>>, vector<8x256xf32>,
    %c0_68 = arith.constant 0 : index
    %c16_69 = arith.constant 16 : index
    %86 = vector.load %arg21[%c0_68, %c16_69] : memref<16x290xf32, #tpu.memory_space<vmem>>, vector<8x256xf32>
    %87 = vector.broadcast %70 : vector<1x256xf32> to vector<8x256xf32>
    %88 = arith.mulf %86, %87 : vector<8x256xf32>
    %c24_70 = arith.constant 24 : index
    %c0_71 = arith.constant 0 : index
    %89 = vector.load %arg22[%c24_70, %c0_71] : memref<144x256xf32, #tpu.memory_space<vmem>>, vector<8x256xf32>
    tpu.vector_store %arg22[%c24_70, %c0_71], %88 {strides = array<i32>} : memref<144x256xf32, #tpu.memory_space<vmem>>, vector<8x256xf32>,
    %c0_72 = arith.constant 0 : index
    %c17_73 = arith.constant 17 : index
    %90 = vector.load %arg21[%c0_72, %c17_73] : memref<16x290xf32, #tpu.memory_space<vmem>>, vector<8x256xf32>
    %c32_74 = arith.constant 32 : index
    %c0_75 = arith.constant 0 : index
    %91 = vector.load %arg22[%c32_74, %c0_75] : memref<144x256xf32, #tpu.memory_space<vmem>>, vector<8x256xf32>
    tpu.vector_store %arg22[%c32_74, %c0_75], %90 {strides = array<i32>} : memref<144x256xf32, #tpu.memory_space<vmem>>, vector<8x256xf32>,
    %c0_76 = arith.constant 0 : index
    %c18_77 = arith.constant 18 : index
    %92 = vector.load %arg21[%c0_76, %c18_77] : memref<16x290xf32, #tpu.memory_space<vmem>>, vector<8x256xf32>
    %93 = vector.broadcast %75 : vector<1x256xf32> to vector<8x256xf32>
    %94 = arith.mulf %92, %93 : vector<8x256xf32>
    %c40 = arith.constant 40 : index
    %c0_78 = arith.constant 0 : index
    %95 = vector.load %arg22[%c40, %c0_78] : memref<144x256xf32, #tpu.memory_space<vmem>>, vector<8x256xf32>
    tpu.vector_store %arg22[%c40, %c0_78], %94 {strides = array<i32>} : memref<144x256xf32, #tpu.memory_space<vmem>>, vector<8x256xf32>,
    %c0_79 = arith.constant 0 : index
    %c32_80 = arith.constant 32 : index
    %96 = vector.load %arg21[%c0_79, %c32_80] : memref<16x290xf32, #tpu.memory_space<vmem>>, vector<8x256xf32>
    %97 = vector.broadcast %70 : vector<1x256xf32> to vector<8x256xf32>
    %98 = arith.mulf %96, %97 : vector<8x256xf32>
    %c48 = arith.constant 48 : index
    %c0_81 = arith.constant 0 : index
    %99 = vector.load %arg22[%c48, %c0_81] : memref<144x256xf32, #tpu.memory_space<vmem>>, vector<8x256xf32>
    tpu.vector_store %arg22[%c48, %c0_81], %98 {strides = array<i32>} : memref<144x256xf32, #tpu.memory_space<vmem>>, vector<8x256xf32>,
    %c0_82 = arith.constant 0 : index
    %c33_83 = arith.constant 33 : index
    %100 = vector.load %arg21[%c0_82, %c33_83] : memref<16x290xf32, #tpu.memory_space<vmem>>, vector<8x256xf32>
    %c56 = arith.constant 56 : index
    %c0_84 = arith.constant 0 : index
    %101 = vector.load %arg22[%c56, %c0_84] : memref<144x256xf32, #tpu.memory_space<vmem>>, vector<8x256xf32>
    tpu.vector_store %arg22[%c56, %c0_84], %100 {strides = array<i32>} : memref<144x256xf32, #tpu.memory_space<vmem>>, vector<8x256xf32>,
    %c0_85 = arith.constant 0 : index
    %c34_86 = arith.constant 34 : index
    %102 = vector.load %arg21[%c0_85, %c34_86] : memref<16x290xf32, #tpu.memory_space<vmem>>, vector<8x256xf32>
    %103 = vector.broadcast %75 : vector<1x256xf32> to vector<8x256xf32>
    %104 = arith.mulf %102, %103 : vector<8x256xf32>
    %c64 = arith.constant 64 : index
    %c0_87 = arith.constant 0 : index
    %105 = vector.load %arg22[%c64, %c0_87] : memref<144x256xf32, #tpu.memory_space<vmem>>, vector<8x256xf32>
    tpu.vector_store %arg22[%c64, %c0_87], %104 {strides = array<i32>} : memref<144x256xf32, #tpu.memory_space<vmem>>, vector<8x256xf32>,
    %c0_88 = arith.constant 0 : index
    %c0_89 = arith.constant 0 : index
    %106 = vector.load %arg4[%c0_88, %c0_89] : memref<8x72xf32, #tpu.memory_space<vmem>>, vector<8x72xf32>
    %c0_90 = arith.constant 0 : index
    %c0_91 = arith.constant 0 : index
    %107 = vector.load %arg22[%c0_90, %c0_91] : memref<144x256xf32, #tpu.memory_space<vmem>>, vector<72x256xf32>
    %cst_92 = arith.constant dense<0.000000e+00> : vector<8x256xf32>
    %108 = tpu.matmul %106, %107, %cst_92 {dimension_numbers = #tpu.dot_dimension_numbers<[1], [0], [0], [1], [0, 0, 1, 1], [], []>} : vector<8x72xf32>, vector<72x256xf32>, vector<8x256xf32> -> vector<8x256xf32>
    %c0_93 = arith.constant 0 : index
    %c0_94 = arith.constant 0 : index
    %109 = vector.load %arg5[%c0_93, %c0_94] : memref<8x1xf32, #tpu.memory_space<vmem>>, vector<8x1xf32>
    %110 = vector.broadcast %109 : vector<8x1xf32> to vector<8x256xf32>
    %111 = arith.addf %108, %110 : vector<8x256xf32>
    %cst_95 = arith.constant 0.000000e+00 : f32
    %112 = vector.broadcast %cst_95 : f32 to vector<8x256xf32>
    %113 = arith.maximumf %111, %112 : vector<8x256xf32>
    %cst_96 = arith.constant 0.000000e+00 : f32
    %114 = vector.broadcast %cst_96 : f32 to vector<8x17xf32>
    %c0_97 = arith.constant 0 : index
    %c0_98 = arith.constant 0 : index
    %115 = vector.load %arg21[%c0_97, %c0_98] : memref<16x290xf32, #tpu.memory_space<vmem>>, vector<8x17xf32>
    tpu.vector_store %arg21[%c0_97, %c0_98], %114 {strides = array<i32>} : memref<16x290xf32, #tpu.memory_space<vmem>>, vector<8x17xf32>,
    %cst_99 = arith.constant 0.000000e+00 : f32
    %116 = vector.broadcast %cst_99 : f32 to vector<8x17xf32>
    %c0_100 = arith.constant 0 : index
    %c273_101 = arith.constant 273 : index
    %117 = vector.load %arg21[%c0_100, %c273_101] : memref<16x290xf32, #tpu.memory_space<vmem>>, vector<8x17xf32>
    tpu.vector_store %arg21[%c0_100, %c273_101], %116 {strides = array<i32>} : memref<16x290xf32, #tpu.memory_space<vmem>>, vector<8x17xf32>,
    %c0_102 = arith.constant 0 : index
    %c17_103 = arith.constant 17 : index
    %118 = vector.load %arg21[%c0_102, %c17_103] : memref<16x290xf32, #tpu.memory_space<vmem>>, vector<8x256xf32>
    tpu.vector_store %arg21[%c0_102, %c17_103], %113 {strides = array<i32>} : memref<16x290xf32, #tpu.memory_space<vmem>>, vector<8x256xf32>,
    %c0_104 = arith.constant 0 : index
    %c18_105 = arith.constant 18 : index
    %119 = vector.load %arg21[%c0_104, %c18_105] : memref<16x290xf32, #tpu.memory_space<vmem>>, vector<8x256xf32>
    %120 = arith.maximumf %113, %119 : vector<8x256xf32>
    %c0_106 = arith.constant 0 : index
    %c17_107 = arith.constant 17 : index
    %121 = vector.load %arg21[%c0_106, %c17_107] : memref<16x290xf32, #tpu.memory_space<vmem>>, vector<8x256xf32>
    tpu.vector_store %arg21[%c0_106, %c17_107], %120 {strides = array<i32>} : memref<16x290xf32, #tpu.memory_space<vmem>>, vector<8x256xf32>,
    %c0_108 = arith.constant 0 : index
    %c33_109 = arith.constant 33 : index
    %122 = vector.load %arg21[%c0_108, %c33_109] : memref<16x290xf32, #tpu.memory_space<vmem>>, vector<8x256xf32>
    %123 = arith.maximumf %120, %122 : vector<8x256xf32>
    %c0_110 = arith.constant 0 : index
    %c0_111 = arith.constant 0 : index
    %124 = vector.load %arg16[%c0_110, %c0_111] : memref<256x64xf32, #tpu.memory_space<vmem>>, vector<256x64xf32>
    %cst_112 = arith.constant dense<0.000000e+00> : vector<8x64xf32>
    %125 = tpu.matmul %123, %124, %cst_112 {dimension_numbers = #tpu.dot_dimension_numbers<[1], [0], [0], [1], [0, 0, 1, 1], [], []>} : vector<8x256xf32>, vector<256x64xf32>, vector<8x64xf32> -> vector<8x64xf32>
    %cst_113 = arith.constant 0.000000e+00 : f32
    %126 = vector.broadcast %cst_113 : f32 to vector<8x9xf32>
    %c0_114 = arith.constant 0 : index
    %c0_115 = arith.constant 0 : index
    %127 = vector.load %arg21[%c0_114, %c0_115] : memref<16x290xf32, #tpu.memory_space<vmem>>, vector<8x9xf32>
    tpu.vector_store %arg21[%c0_114, %c0_115], %126 {strides = array<i32>} : memref<16x290xf32, #tpu.memory_space<vmem>>, vector<8x9xf32>,
    %cst_116 = arith.constant 0.000000e+00 : f32
    %128 = vector.broadcast %cst_116 : f32 to vector<8x9xf32>
    %c0_117 = arith.constant 0 : index
    %c73 = arith.constant 73 : index
    %129 = vector.load %arg21[%c0_117, %c73] : memref<16x290xf32, #tpu.memory_space<vmem>>, vector<8x9xf32>
    tpu.vector_store %arg21[%c0_117, %c73], %128 {strides = array<i32>} : memref<16x290xf32, #tpu.memory_space<vmem>>, vector<8x9xf32>,
    %c0_118 = arith.constant 0 : index
    %c9_119 = arith.constant 9 : index
    %130 = vector.load %arg21[%c0_118, %c9_119] : memref<16x290xf32, #tpu.memory_space<vmem>>, vector<8x64xf32>
    tpu.vector_store %arg21[%c0_118, %c9_119], %125 {strides = array<i32>} : memref<16x290xf32, #tpu.memory_space<vmem>>, vector<8x64xf32>,
    %131 = tpu.iota {dimensions = array<i32: 1>} : vector<1x64xi32>
    %c7_i32 = arith.constant 7 : i32
    %132 = vector.broadcast %c7_i32 : i32 to vector<1x64xi32>
    %133 = arith.andi %131, %132 : vector<1x64xi32>
    %c0_i32_120 = arith.constant 0 : i32
    %134 = vector.broadcast %c0_i32_120 : i32 to vector<1x64xi32>
    %135 = arith.cmpi sgt, %133, %134 : vector<1x64xi32>
    %cst_121 = arith.constant 1.000000e+00 : f32
    %cst_122 = arith.constant 0.000000e+00 : f32
    %136 = vector.broadcast %cst_121 : f32 to vector<1x64xf32>
    %137 = vector.broadcast %cst_122 : f32 to vector<1x64xf32>
    %138 = arith.select %135, %136, %137 : vector<1x64xi1>, vector<1x64xf32>
    %c7_i32_123 = arith.constant 7 : i32
    %139 = vector.broadcast %c7_i32_123 : i32 to vector<1x64xi32>
    %140 = arith.cmpi slt, %133, %139 : vector<1x64xi32>
    %cst_124 = arith.constant 1.000000e+00 : f32
    %cst_125 = arith.constant 0.000000e+00 : f32
    %141 = vector.broadcast %cst_124 : f32 to vector<1x64xf32>
    %142 = vector.broadcast %cst_125 : f32 to vector<1x64xf32>
    %143 = arith.select %140, %141, %142 : vector<1x64xi1>, vector<1x64xf32>
    %c0_126 = arith.constant 0 : index
    %c0_127 = arith.constant 0 : index
    %144 = vector.load %arg21[%c0_126, %c0_127] : memref<16x290xf32, #tpu.memory_space<vmem>>, vector<8x64xf32>
    %145 = vector.broadcast %138 : vector<1x64xf32> to vector<8x64xf32>
    %146 = arith.mulf %144, %145 : vector<8x64xf32>
    %c0_128 = arith.constant 0 : index
    %c0_129 = arith.constant 0 : index
    %147 = vector.load %arg22[%c0_128, %c0_129] : memref<144x256xf32, #tpu.memory_space<vmem>>, vector<8x64xf32>
    tpu.vector_store %arg22[%c0_128, %c0_129], %146 {strides = array<i32>} : memref<144x256xf32, #tpu.memory_space<vmem>>, vector<8x64xf32>,
    %c0_130 = arith.constant 0 : index
    %c1_131 = arith.constant 1 : index
    %148 = vector.load %arg21[%c0_130, %c1_131] : memref<16x290xf32, #tpu.memory_space<vmem>>, vector<8x64xf32>
    %c8_132 = arith.constant 8 : index
    %c0_133 = arith.constant 0 : index
    %149 = vector.load %arg22[%c8_132, %c0_133] : memref<144x256xf32, #tpu.memory_space<vmem>>, vector<8x64xf32>
    tpu.vector_store %arg22[%c8_132, %c0_133], %148 {strides = array<i32>} : memref<144x256xf32, #tpu.memory_space<vmem>>, vector<8x64xf32>,
    %c0_134 = arith.constant 0 : index
    %c2_135 = arith.constant 2 : index
    %150 = vector.load %arg21[%c0_134, %c2_135] : memref<16x290xf32, #tpu.memory_space<vmem>>, vector<8x64xf32>
    %151 = vector.broadcast %143 : vector<1x64xf32> to vector<8x64xf32>
    %152 = arith.mulf %150, %151 : vector<8x64xf32>
    %c16_136 = arith.constant 16 : index
    %c0_137 = arith.constant 0 : index
    %153 = vector.load %arg22[%c16_136, %c0_137] : memref<144x256xf32, #tpu.memory_space<vmem>>, vector<8x64xf32>
    tpu.vector_store %arg22[%c16_136, %c0_137], %152 {strides = array<i32>} : memref<144x256xf32, #tpu.memory_space<vmem>>, vector<8x64xf32>,
    %c0_138 = arith.constant 0 : index
    %c8_139 = arith.constant 8 : index
    %154 = vector.load %arg21[%c0_138, %c8_139] : memref<16x290xf32, #tpu.memory_space<vmem>>, vector<8x64xf32>
    %155 = vector.broadcast %138 : vector<1x64xf32> to vector<8x64xf32>
    %156 = arith.mulf %154, %155 : vector<8x64xf32>
    %c24_140 = arith.constant 24 : index
    %c0_141 = arith.constant 0 : index
    %157 = vector.load %arg22[%c24_140, %c0_141] : memref<144x256xf32, #tpu.memory_space<vmem>>, vector<8x64xf32>
    tpu.vector_store %arg22[%c24_140, %c0_141], %156 {strides = array<i32>} : memref<144x256xf32, #tpu.memory_space<vmem>>, vector<8x64xf32>,
    %c0_142 = arith.constant 0 : index
    %c9_143 = arith.constant 9 : index
    %158 = vector.load %arg21[%c0_142, %c9_143] : memref<16x290xf32, #tpu.memory_space<vmem>>, vector<8x64xf32>
    %c32_144 = arith.constant 32 : index
    %c0_145 = arith.constant 0 : index
    %159 = vector.load %arg22[%c32_144, %c0_145] : memref<144x256xf32, #tpu.memory_space<vmem>>, vector<8x64xf32>
    tpu.vector_store %arg22[%c32_144, %c0_145], %158 {strides = array<i32>} : memref<144x256xf32, #tpu.memory_space<vmem>>, vector<8x64xf32>,
    %c0_146 = arith.constant 0 : index
    %c10 = arith.constant 10 : index
    %160 = vector.load %arg21[%c0_146, %c10] : memref<16x290xf32, #tpu.memory_space<vmem>>, vector<8x64xf32>
    %161 = vector.broadcast %143 : vector<1x64xf32> to vector<8x64xf32>
    %162 = arith.mulf %160, %161 : vector<8x64xf32>
    %c40_147 = arith.constant 40 : index
    %c0_148 = arith.constant 0 : index
    %163 = vector.load %arg22[%c40_147, %c0_148] : memref<144x256xf32, #tpu.memory_space<vmem>>, vector<8x64xf32>
    tpu.vector_store %arg22[%c40_147, %c0_148], %162 {strides = array<i32>} : memref<144x256xf32, #tpu.memory_space<vmem>>, vector<8x64xf32>,
    %c0_149 = arith.constant 0 : index
    %c16_150 = arith.constant 16 : index
    %164 = vector.load %arg21[%c0_149, %c16_150] : memref<16x290xf32, #tpu.memory_space<vmem>>, vector<8x64xf32>
    %165 = vector.broadcast %138 : vector<1x64xf32> to vector<8x64xf32>
    %166 = arith.mulf %164, %165 : vector<8x64xf32>
    %c48_151 = arith.constant 48 : index
    %c0_152 = arith.constant 0 : index
    %167 = vector.load %arg22[%c48_151, %c0_152] : memref<144x256xf32, #tpu.memory_space<vmem>>, vector<8x64xf32>
    tpu.vector_store %arg22[%c48_151, %c0_152], %166 {strides = array<i32>} : memref<144x256xf32, #tpu.memory_space<vmem>>, vector<8x64xf32>,
    %c0_153 = arith.constant 0 : index
    %c17_154 = arith.constant 17 : index
    %168 = vector.load %arg21[%c0_153, %c17_154] : memref<16x290xf32, #tpu.memory_space<vmem>>, vector<8x64xf32>
    %c56_155 = arith.constant 56 : index
    %c0_156 = arith.constant 0 : index
    %169 = vector.load %arg22[%c56_155, %c0_156] : memref<144x256xf32, #tpu.memory_space<vmem>>, vector<8x64xf32>
    tpu.vector_store %arg22[%c56_155, %c0_156], %168 {strides = array<i32>} : memref<144x256xf32, #tpu.memory_space<vmem>>, vector<8x64xf32>,
    %c0_157 = arith.constant 0 : index
    %c18_158 = arith.constant 18 : index
    %170 = vector.load %arg21[%c0_157, %c18_158] : memref<16x290xf32, #tpu.memory_space<vmem>>, vector<8x64xf32>
    %171 = vector.broadcast %143 : vector<1x64xf32> to vector<8x64xf32>
    %172 = arith.mulf %170, %171 : vector<8x64xf32>
    %c64_159 = arith.constant 64 : index
    %c0_160 = arith.constant 0 : index
    %173 = vector.load %arg22[%c64_159, %c0_160] : memref<144x256xf32, #tpu.memory_space<vmem>>, vector<8x64xf32>
    tpu.vector_store %arg22[%c64_159, %c0_160], %172 {strides = array<i32>} : memref<144x256xf32, #tpu.memory_space<vmem>>, vector<8x64xf32>,
    %c0_161 = arith.constant 0 : index
    %c0_162 = arith.constant 0 : index
    %174 = vector.load %arg6[%c0_161, %c0_162] : memref<16x72xf32, #tpu.memory_space<vmem>>, vector<16x72xf32>
    %c0_163 = arith.constant 0 : index
    %c0_164 = arith.constant 0 : index
    %175 = vector.load %arg22[%c0_163, %c0_164] : memref<144x256xf32, #tpu.memory_space<vmem>>, vector<72x64xf32>
    %cst_165 = arith.constant dense<0.000000e+00> : vector<16x64xf32>
    %176 = tpu.matmul %174, %175, %cst_165 {dimension_numbers = #tpu.dot_dimension_numbers<[1], [0], [0], [1], [0, 0, 1, 1], [], []>} : vector<16x72xf32>, vector<72x64xf32>, vector<16x64xf32> -> vector<16x64xf32>
    %c0_166 = arith.constant 0 : index
    %c0_167 = arith.constant 0 : index
    %177 = vector.load %arg7[%c0_166, %c0_167] : memref<16x1xf32, #tpu.memory_space<vmem>>, vector<16x1xf32>
    %178 = vector.broadcast %177 : vector<16x1xf32> to vector<16x64xf32>
    %179 = arith.addf %176, %178 : vector<16x64xf32>
    %cst_168 = arith.constant 0.000000e+00 : f32
    %180 = vector.broadcast %cst_168 : f32 to vector<16x64xf32>
    %181 = arith.maximumf %179, %180 : vector<16x64xf32>
    %cst_169 = arith.constant 0.000000e+00 : f32
    %182 = vector.broadcast %cst_169 : f32 to vector<16x9xf32>
    %c0_170 = arith.constant 0 : index
    %c0_171 = arith.constant 0 : index
    %183 = vector.load %arg21[%c0_170, %c0_171] : memref<16x290xf32, #tpu.memory_space<vmem>>, vector<16x9xf32>
    tpu.vector_store %arg21[%c0_170, %c0_171], %182 {strides = array<i32>} : memref<16x290xf32, #tpu.memory_space<vmem>>, vector<16x9xf32>,
    %cst_172 = arith.constant 0.000000e+00 : f32
    %184 = vector.broadcast %cst_172 : f32 to vector<16x9xf32>
    %c0_173 = arith.constant 0 : index
    %c73_174 = arith.constant 73 : index
    %185 = vector.load %arg21[%c0_173, %c73_174] : memref<16x290xf32, #tpu.memory_space<vmem>>, vector<16x9xf32>
    tpu.vector_store %arg21[%c0_173, %c73_174], %184 {strides = array<i32>} : memref<16x290xf32, #tpu.memory_space<vmem>>, vector<16x9xf32>,
    %c0_175 = arith.constant 0 : index
    %c9_176 = arith.constant 9 : index
    %186 = vector.load %arg21[%c0_175, %c9_176] : memref<16x290xf32, #tpu.memory_space<vmem>>, vector<16x64xf32>
    tpu.vector_store %arg21[%c0_175, %c9_176], %181 {strides = array<i32>} : memref<16x290xf32, #tpu.memory_space<vmem>>, vector<16x64xf32>,
    %187 = tpu.iota {dimensions = array<i32: 1>} : vector<1x64xi32>
    %c7_i32_177 = arith.constant 7 : i32
    %188 = vector.broadcast %c7_i32_177 : i32 to vector<1x64xi32>
    %189 = arith.andi %187, %188 : vector<1x64xi32>
    %c0_i32_178 = arith.constant 0 : i32
    %190 = vector.broadcast %c0_i32_178 : i32 to vector<1x64xi32>
    %191 = arith.cmpi sgt, %189, %190 : vector<1x64xi32>
    %cst_179 = arith.constant 1.000000e+00 : f32
    %cst_180 = arith.constant 0.000000e+00 : f32
    %192 = vector.broadcast %cst_179 : f32 to vector<1x64xf32>
    %193 = vector.broadcast %cst_180 : f32 to vector<1x64xf32>
    %194 = arith.select %191, %192, %193 : vector<1x64xi1>, vector<1x64xf32>
    %c7_i32_181 = arith.constant 7 : i32
    %195 = vector.broadcast %c7_i32_181 : i32 to vector<1x64xi32>
    %196 = arith.cmpi slt, %189, %195 : vector<1x64xi32>
    %cst_182 = arith.constant 1.000000e+00 : f32
    %cst_183 = arith.constant 0.000000e+00 : f32
    %197 = vector.broadcast %cst_182 : f32 to vector<1x64xf32>
    %198 = vector.broadcast %cst_183 : f32 to vector<1x64xf32>
    %199 = arith.select %196, %197, %198 : vector<1x64xi1>, vector<1x64xf32>
    %c0_184 = arith.constant 0 : index
    %c0_185 = arith.constant 0 : index
    %200 = vector.load %arg21[%c0_184, %c0_185] : memref<16x290xf32, #tpu.memory_space<vmem>>, vector<16x64xf32>
    %201 = vector.broadcast %194 : vector<1x64xf32> to vector<16x64xf32>
    %202 = arith.mulf %200, %201 : vector<16x64xf32>
    %c0_186 = arith.constant 0 : index
    %c0_187 = arith.constant 0 : index
    %203 = vector.load %arg22[%c0_186, %c0_187] : memref<144x256xf32, #tpu.memory_space<vmem>>, vector<16x64xf32>
    tpu.vector_store %arg22[%c0_186, %c0_187], %202 {strides = array<i32>} : memref<144x256xf32, #tpu.memory_space<vmem>>, vector<16x64xf32>,
    %c0_188 = arith.constant 0 : index
    %c1_189 = arith.constant 1 : index
    %204 = vector.load %arg21[%c0_188, %c1_189] : memref<16x290xf32, #tpu.memory_space<vmem>>, vector<16x64xf32>
    %c16_190 = arith.constant 16 : index
    %c0_191 = arith.constant 0 : index
    %205 = vector.load %arg22[%c16_190, %c0_191] : memref<144x256xf32, #tpu.memory_space<vmem>>, vector<16x64xf32>
    tpu.vector_store %arg22[%c16_190, %c0_191], %204 {strides = array<i32>} : memref<144x256xf32, #tpu.memory_space<vmem>>, vector<16x64xf32>,
    %c0_192 = arith.constant 0 : index
    %c2_193 = arith.constant 2 : index
    %206 = vector.load %arg21[%c0_192, %c2_193] : memref<16x290xf32, #tpu.memory_space<vmem>>, vector<16x64xf32>
    %207 = vector.broadcast %199 : vector<1x64xf32> to vector<16x64xf32>
    %208 = arith.mulf %206, %207 : vector<16x64xf32>
    %c32_194 = arith.constant 32 : index
    %c0_195 = arith.constant 0 : index
    %209 = vector.load %arg22[%c32_194, %c0_195] : memref<144x256xf32, #tpu.memory_space<vmem>>, vector<16x64xf32>
    tpu.vector_store %arg22[%c32_194, %c0_195], %208 {strides = array<i32>} : memref<144x256xf32, #tpu.memory_space<vmem>>, vector<16x64xf32>,
    %c0_196 = arith.constant 0 : index
    %c8_197 = arith.constant 8 : index
    %210 = vector.load %arg21[%c0_196, %c8_197] : memref<16x290xf32, #tpu.memory_space<vmem>>, vector<16x64xf32>
    %211 = vector.broadcast %194 : vector<1x64xf32> to vector<16x64xf32>
    %212 = arith.mulf %210, %211 : vector<16x64xf32>
    %c48_198 = arith.constant 48 : index
    %c0_199 = arith.constant 0 : index
    %213 = vector.load %arg22[%c48_198, %c0_199] : memref<144x256xf32, #tpu.memory_space<vmem>>, vector<16x64xf32>
    tpu.vector_store %arg22[%c48_198, %c0_199], %212 {strides = array<i32>} : memref<144x256xf32, #tpu.memory_space<vmem>>, vector<16x64xf32>,
    %c0_200 = arith.constant 0 : index
    %c9_201 = arith.constant 9 : index
    %214 = vector.load %arg21[%c0_200, %c9_201] : memref<16x290xf32, #tpu.memory_space<vmem>>, vector<16x64xf32>
    %c64_202 = arith.constant 64 : index
    %c0_203 = arith.constant 0 : index
    %215 = vector.load %arg22[%c64_202, %c0_203] : memref<144x256xf32, #tpu.memory_space<vmem>>, vector<16x64xf32>
    tpu.vector_store %arg22[%c64_202, %c0_203], %214 {strides = array<i32>} : memref<144x256xf32, #tpu.memory_space<vmem>>, vector<16x64xf32>,
    %c0_204 = arith.constant 0 : index
    %c10_205 = arith.constant 10 : index
    %216 = vector.load %arg21[%c0_204, %c10_205] : memref<16x290xf32, #tpu.memory_space<vmem>>, vector<16x64xf32>
    %217 = vector.broadcast %199 : vector<1x64xf32> to vector<16x64xf32>
    %218 = arith.mulf %216, %217 : vector<16x64xf32>
    %c80 = arith.constant 80 : index
    %c0_206 = arith.constant 0 : index
    %219 = vector.load %arg22[%c80, %c0_206] : memref<144x256xf32, #tpu.memory_space<vmem>>, vector<16x64xf32>
    tpu.vector_store %arg22[%c80, %c0_206], %218 {strides = array<i32>} : memref<144x256xf32, #tpu.memory_space<vmem>>, vector<16x64xf32>,
    %c0_207 = arith.constant 0 : index
    %c16_208 = arith.constant 16 : index
    %220 = vector.load %arg21[%c0_207, %c16_208] : memref<16x290xf32, #tpu.memory_space<vmem>>, vector<16x64xf32>
    %221 = vector.broadcast %194 : vector<1x64xf32> to vector<16x64xf32>
    %222 = arith.mulf %220, %221 : vector<16x64xf32>
    %c96 = arith.constant 96 : index
    %c0_209 = arith.constant 0 : index
    %223 = vector.load %arg22[%c96, %c0_209] : memref<144x256xf32, #tpu.memory_space<vmem>>, vector<16x64xf32>
    tpu.vector_store %arg22[%c96, %c0_209], %222 {strides = array<i32>} : memref<144x256xf32, #tpu.memory_space<vmem>>, vector<16x64xf32>,
    %c0_210 = arith.constant 0 : index
    %c17_211 = arith.constant 17 : index
    %224 = vector.load %arg21[%c0_210, %c17_211] : memref<16x290xf32, #tpu.memory_space<vmem>>, vector<16x64xf32>
    %c112 = arith.constant 112 : index
    %c0_212 = arith.constant 0 : index
    %225 = vector.load %arg22[%c112, %c0_212] : memref<144x256xf32, #tpu.memory_space<vmem>>, vector<16x64xf32>
    tpu.vector_store %arg22[%c112, %c0_212], %224 {strides = array<i32>} : memref<144x256xf32, #tpu.memory_space<vmem>>, vector<16x64xf32>,
    %c0_213 = arith.constant 0 : index
    %c18_214 = arith.constant 18 : index
    %226 = vector.load %arg21[%c0_213, %c18_214] : memref<16x290xf32, #tpu.memory_space<vmem>>, vector<16x64xf32>
    %227 = vector.broadcast %199 : vector<1x64xf32> to vector<16x64xf32>
    %228 = arith.mulf %226, %227 : vector<16x64xf32>
    %c128 = arith.constant 128 : index
    %c0_215 = arith.constant 0 : index
    %229 = vector.load %arg22[%c128, %c0_215] : memref<144x256xf32, #tpu.memory_space<vmem>>, vector<16x64xf32>
    tpu.vector_store %arg22[%c128, %c0_215], %228 {strides = array<i32>} : memref<144x256xf32, #tpu.memory_space<vmem>>, vector<16x64xf32>,
    %c0_216 = arith.constant 0 : index
    %c0_217 = arith.constant 0 : index
    %230 = vector.load %arg8[%c0_216, %c0_217] : memref<16x144xf32, #tpu.memory_space<vmem>>, vector<16x144xf32>
    %c0_218 = arith.constant 0 : index
    %c0_219 = arith.constant 0 : index
    %231 = vector.load %arg22[%c0_218, %c0_219] : memref<144x256xf32, #tpu.memory_space<vmem>>, vector<144x64xf32>
    %cst_220 = arith.constant dense<0.000000e+00> : vector<16x64xf32>
    %232 = tpu.matmul %230, %231, %cst_220 {dimension_numbers = #tpu.dot_dimension_numbers<[1], [0], [0], [1], [0, 0, 1, 1], [], []>} : vector<16x144xf32>, vector<144x64xf32>, vector<16x64xf32> -> vector<16x64xf32>
    %c0_221 = arith.constant 0 : index
    %c0_222 = arith.constant 0 : index
    %233 = vector.load %arg9[%c0_221, %c0_222] : memref<16x1xf32, #tpu.memory_space<vmem>>, vector<16x1xf32>
    %234 = vector.broadcast %233 : vector<16x1xf32> to vector<16x64xf32>
    %235 = arith.addf %232, %234 : vector<16x64xf32>
    %cst_223 = arith.constant 0.000000e+00 : f32
    %236 = vector.broadcast %cst_223 : f32 to vector<16x64xf32>
    %237 = arith.maximumf %235, %236 : vector<16x64xf32>
    %c0_224 = arith.constant 0 : index
    %c0_225 = arith.constant 0 : index
    %c0_226 = arith.constant 0 : index
    %238 = vector.load %arg20[%c0_224, %c0_225, %c0_226] : memref<1x16x64xf32, #tpu.memory_space<vmem>>, vector<1x16x64xf32>
    %239 = vector.shape_cast %238 : vector<1x16x64xf32> to vector<16x64xf32>
    %240 = vector.shape_cast %237 : vector<16x64xf32> to vector<1x16x64xf32>
    tpu.vector_store %arg20[%c0_224, %c0_225, %c0_226], %240 {strides = array<i32>} : memref<1x16x64xf32, #tpu.memory_space<vmem>>, vector<1x16x64xf32>,
    %cst_227 = arith.constant 0.000000e+00 : f32
    %241 = vector.broadcast %cst_227 : f32 to vector<16x9xf32>
    %c0_228 = arith.constant 0 : index
    %c0_229 = arith.constant 0 : index
    %242 = vector.load %arg21[%c0_228, %c0_229] : memref<16x290xf32, #tpu.memory_space<vmem>>, vector<16x9xf32>
    tpu.vector_store %arg21[%c0_228, %c0_229], %241 {strides = array<i32>} : memref<16x290xf32, #tpu.memory_space<vmem>>, vector<16x9xf32>,
    %cst_230 = arith.constant 0.000000e+00 : f32
    %243 = vector.broadcast %cst_230 : f32 to vector<16x9xf32>
    %c0_231 = arith.constant 0 : index
    %c73_232 = arith.constant 73 : index
    %244 = vector.load %arg21[%c0_231, %c73_232] : memref<16x290xf32, #tpu.memory_space<vmem>>, vector<16x9xf32>
    tpu.vector_store %arg21[%c0_231, %c73_232], %243 {strides = array<i32>} : memref<16x290xf32, #tpu.memory_space<vmem>>, vector<16x9xf32>,
    %c0_233 = arith.constant 0 : index
    %c9_234 = arith.constant 9 : index
    %245 = vector.load %arg21[%c0_233, %c9_234] : memref<16x290xf32, #tpu.memory_space<vmem>>, vector<16x64xf32>
    tpu.vector_store %arg21[%c0_233, %c9_234], %237 {strides = array<i32>} : memref<16x290xf32, #tpu.memory_space<vmem>>, vector<16x64xf32>,
    %c0_235 = arith.constant 0 : index
    %c10_236 = arith.constant 10 : index
    %246 = vector.load %arg21[%c0_235, %c10_236] : memref<16x290xf32, #tpu.memory_space<vmem>>, vector<16x64xf32>
    %247 = arith.maximumf %237, %246 : vector<16x64xf32>
    %c0_237 = arith.constant 0 : index
    %c9_238 = arith.constant 9 : index
    %248 = vector.load %arg21[%c0_237, %c9_238] : memref<16x290xf32, #tpu.memory_space<vmem>>, vector<16x64xf32>
    tpu.vector_store %arg21[%c0_237, %c9_238], %247 {strides = array<i32>} : memref<16x290xf32, #tpu.memory_space<vmem>>, vector<16x64xf32>,
    %c0_239 = arith.constant 0 : index
    %c17_240 = arith.constant 17 : index
    %249 = vector.load %arg21[%c0_239, %c17_240] : memref<16x290xf32, #tpu.memory_space<vmem>>, vector<16x64xf32>
    %250 = arith.maximumf %247, %249 : vector<16x64xf32>
    %c0_241 = arith.constant 0 : index
    %c0_242 = arith.constant 0 : index
    %251 = vector.load %arg17[%c0_241, %c0_242] : memref<64x256xf32, #tpu.memory_space<vmem>>, vector<64x256xf32>
    %cst_243 = arith.constant dense<0.000000e+00> : vector<16x256xf32>
    %252 = tpu.matmul %250, %251, %cst_243 {dimension_numbers = #tpu.dot_dimension_numbers<[1], [0], [0], [1], [0, 0, 1, 1], [], []>} : vector<16x64xf32>, vector<64x256xf32>, vector<16x256xf32> -> vector<16x256xf32>
    %c0_244 = arith.constant 0 : index
    %c0_245 = arith.constant 0 : index
    %253 = vector.load %arg18[%c0_244, %c0_245] : memref<16x256xf32, #tpu.memory_space<vmem>>, vector<16x256xf32>
    %254 = arith.mulf %252, %253 : vector<16x256xf32>
    %cst_246 = arith.constant dense<0.000000e+00> : vector<256xf32>
    %255 = vector.multi_reduction <add>, %254, %cst_246 [0] : vector<16x256xf32> to vector<256xf32>
    %256 = vector.shape_cast %255 : vector<256xf32> to vector<1x256xf32>
    %c0_247 = arith.constant 0 : index
    %c0_248 = arith.constant 0 : index
    %257 = vector.load %arg10[%c0_247, %c0_248] : memref<256x64xf32, #tpu.memory_space<vmem>>, vector<256x64xf32>
    %cst_249 = arith.constant dense<0.000000e+00> : vector<1x64xf32>
    %258 = tpu.matmul %256, %257, %cst_249 {dimension_numbers = #tpu.dot_dimension_numbers<[1], [0], [0], [1], [0, 0, 1, 1], [], []>} : vector<1x256xf32>, vector<256x64xf32>, vector<1x64xf32> -> vector<1x64xf32>
    %c0_250 = arith.constant 0 : index
    %c0_251 = arith.constant 0 : index
    %259 = vector.load %arg11[%c0_250, %c0_251] : memref<1x64xf32, #tpu.memory_space<vmem>>, vector<1x64xf32>
    %260 = arith.addf %258, %259 : vector<1x64xf32>
    %cst_252 = arith.constant 0.000000e+00 : f32
    %261 = vector.broadcast %cst_252 : f32 to vector<1x64xf32>
    %262 = arith.maximumf %260, %261 : vector<1x64xf32>
    %c0_253 = arith.constant 0 : index
    %c0_254 = arith.constant 0 : index
    %263 = vector.load %arg12[%c0_253, %c0_254] : memref<64x64xf32, #tpu.memory_space<vmem>>, vector<64x64xf32>
    %cst_255 = arith.constant dense<0.000000e+00> : vector<1x64xf32>
    %264 = tpu.matmul %262, %263, %cst_255 {dimension_numbers = #tpu.dot_dimension_numbers<[1], [0], [0], [1], [0, 0, 1, 1], [], []>} : vector<1x64xf32>, vector<64x64xf32>, vector<1x64xf32> -> vector<1x64xf32>
    %c0_256 = arith.constant 0 : index
    %c0_257 = arith.constant 0 : index
    %265 = vector.load %arg13[%c0_256, %c0_257] : memref<1x64xf32, #tpu.memory_space<vmem>>, vector<1x64xf32>
    %266 = arith.addf %264, %265 : vector<1x64xf32>
    %cst_258 = arith.constant 0.000000e+00 : f32
    %267 = vector.broadcast %cst_258 : f32 to vector<1x64xf32>
    %268 = arith.maximumf %266, %267 : vector<1x64xf32>
    %c0_259 = arith.constant 0 : index
    %c0_260 = arith.constant 0 : index
    %269 = vector.load %arg14[%c0_259, %c0_260] : memref<64x10xf32, #tpu.memory_space<vmem>>, vector<64x10xf32>
    %cst_261 = arith.constant dense<0.000000e+00> : vector<1x10xf32>
    %270 = tpu.matmul %268, %269, %cst_261 {dimension_numbers = #tpu.dot_dimension_numbers<[1], [0], [0], [1], [0, 0, 1, 1], [], []>} : vector<1x64xf32>, vector<64x10xf32>, vector<1x10xf32> -> vector<1x10xf32>
    %c0_262 = arith.constant 0 : index
    %c0_263 = arith.constant 0 : index
    %271 = vector.load %arg15[%c0_262, %c0_263] : memref<1x10xf32, #tpu.memory_space<vmem>>, vector<1x10xf32>
    %272 = arith.addf %270, %271 : vector<1x10xf32>
    %c0_264 = arith.constant 0 : index
    %c0_265 = arith.constant 0 : index
    %c0_266 = arith.constant 0 : index
    %273 = vector.load %arg19[%c0_264, %c0_265, %c0_266] : memref<1x1x10xf32, #tpu.memory_space<vmem>>, vector<1x1x10xf32>
    %274 = vector.shape_cast %273 : vector<1x1x10xf32> to vector<1x10xf32>
    %275 = vector.shape_cast %272 : vector<1x10xf32> to vector<1x1x10xf32>
    tpu.vector_store %arg19[%c0_264, %c0_265, %c0_266], %275 {strides = array<i32>} : memref<1x1x10xf32, #tpu.memory_space<vmem>>, vector<1x1x10xf32>,
    return
  }
  func.func @transform_0(%arg0: i32) -> (i32, i32, i32) {
    %c0_i32 = arith.constant 0 : i32
    %c0_i32_0 = arith.constant 0 : i32
    %c0_i32_1 = arith.constant 0 : i32
    return %arg0, %c0_i32, %c0_i32_0 : i32, i32, i32
  }
  func.func @transform_1(%arg0: i32) -> (i32, i32) {
    %c0_i32 = arith.constant 0 : i32
    %c0_i32_0 = arith.constant 0 : i32
    %c0_i32_1 = arith.constant 0 : i32
    return %c0_i32, %c0_i32_0 : i32, i32
  }
  func.func @transform_2(%arg0: i32) -> (i32, i32) {
    %c0_i32 = arith.constant 0 : i32
    %c0_i32_0 = arith.constant 0 : i32
    %c0_i32_1 = arith.constant 0 : i32
    return %c0_i32, %c0_i32_0 : i32, i32
  }
  func.func @transform_3(%arg0: i32) -> (i32, i32) {
    %c0_i32 = arith.constant 0 : i32
    %c0_i32_0 = arith.constant 0 : i32
    %c0_i32_1 = arith.constant 0 : i32
    return %c0_i32, %c0_i32_0 : i32, i32
  }
  func.func @transform_4(%arg0: i32) -> (i32, i32) {
    %c0_i32 = arith.constant 0 : i32
    %c0_i32_0 = arith.constant 0 : i32
    %c0_i32_1 = arith.constant 0 : i32
    return %c0_i32, %c0_i32_0 : i32, i32
  }
  func.func @transform_5(%arg0: i32) -> (i32, i32) {
    %c0_i32 = arith.constant 0 : i32
    %c0_i32_0 = arith.constant 0 : i32
    %c0_i32_1 = arith.constant 0 : i32
    return %c0_i32, %c0_i32_0 : i32, i32
  }
  func.func @transform_6(%arg0: i32) -> (i32, i32) {
    %c0_i32 = arith.constant 0 : i32
    %c0_i32_0 = arith.constant 0 : i32
    %c0_i32_1 = arith.constant 0 : i32
    return %c0_i32, %c0_i32_0 : i32, i32
  }
  func.func @transform_7(%arg0: i32) -> (i32, i32) {
    %c0_i32 = arith.constant 0 : i32
    %c0_i32_0 = arith.constant 0 : i32
    %c0_i32_1 = arith.constant 0 : i32
    return %c0_i32, %c0_i32_0 : i32, i32
  }
  func.func @transform_8(%arg0: i32) -> (i32, i32) {
    %c0_i32 = arith.constant 0 : i32
    %c0_i32_0 = arith.constant 0 : i32
    %c0_i32_1 = arith.constant 0 : i32
    return %c0_i32, %c0_i32_0 : i32, i32
  }
  func.func @transform_9(%arg0: i32) -> (i32, i32) {
    %c0_i32 = arith.constant 0 : i32
    %c0_i32_0 = arith.constant 0 : i32
    %c0_i32_1 = arith.constant 0 : i32
    return %c0_i32, %c0_i32_0 : i32, i32
  }
  func.func @transform_10(%arg0: i32) -> (i32, i32) {
    %c0_i32 = arith.constant 0 : i32
    %c0_i32_0 = arith.constant 0 : i32
    %c0_i32_1 = arith.constant 0 : i32
    return %c0_i32, %c0_i32_0 : i32, i32
  }
  func.func @transform_11(%arg0: i32) -> (i32, i32) {
    %c0_i32 = arith.constant 0 : i32
    %c0_i32_0 = arith.constant 0 : i32
    %c0_i32_1 = arith.constant 0 : i32
    return %c0_i32, %c0_i32_0 : i32, i32
  }
  func.func @transform_12(%arg0: i32) -> (i32, i32) {
    %c0_i32 = arith.constant 0 : i32
    %c0_i32_0 = arith.constant 0 : i32
    %c0_i32_1 = arith.constant 0 : i32
    return %c0_i32, %c0_i32_0 : i32, i32
  }
  func.func @transform_13(%arg0: i32) -> (i32, i32) {
    %c0_i32 = arith.constant 0 : i32
    %c0_i32_0 = arith.constant 0 : i32
    %c0_i32_1 = arith.constant 0 : i32
    return %c0_i32, %c0_i32_0 : i32, i32
  }
  func.func @transform_14(%arg0: i32) -> (i32, i32) {
    %c0_i32 = arith.constant 0 : i32
    %c0_i32_0 = arith.constant 0 : i32
    %c0_i32_1 = arith.constant 0 : i32
    return %c0_i32, %c0_i32_0 : i32, i32
  }
  func.func @transform_15(%arg0: i32) -> (i32, i32) {
    %c0_i32 = arith.constant 0 : i32
    %c0_i32_0 = arith.constant 0 : i32
    %c0_i32_1 = arith.constant 0 : i32
    return %c0_i32, %c0_i32_0 : i32, i32
  }
  func.func @transform_16(%arg0: i32) -> (i32, i32) {
    %c0_i32 = arith.constant 0 : i32
    %c0_i32_0 = arith.constant 0 : i32
    %c0_i32_1 = arith.constant 0 : i32
    return %c0_i32, %c0_i32_0 : i32, i32
  }
  func.func @transform_17(%arg0: i32) -> (i32, i32) {
    %c0_i32 = arith.constant 0 : i32
    %c0_i32_0 = arith.constant 0 : i32
    %c0_i32_1 = arith.constant 0 : i32
    return %c0_i32, %c0_i32_0 : i32, i32
  }
  func.func @transform_18(%arg0: i32) -> (i32, i32, i32) {
    %c0_i32 = arith.constant 0 : i32
    %c0_i32_0 = arith.constant 0 : i32
    %c0_i32_1 = arith.constant 0 : i32
    return %arg0, %c0_i32, %c0_i32_0 : i32, i32, i32
  }
  func.func @transform_19(%arg0: i32) -> (i32, i32, i32) {
    %c0_i32 = arith.constant 0 : i32
    %c0_i32_0 = arith.constant 0 : i32
    %c0_i32_1 = arith.constant 0 : i32
    return %arg0, %c0_i32, %c0_i32_0 : i32, i32, i32
  }
}

</mosaic_0001>

<bundles_post_ra>
// kernel: vgg_forward.1
= control target key start
LH: loop header
LB: loop body
LE: loop exit
PB: predicated region body
PF: predicated region fallthrough
CT: control target
= control target key end

     0   :  { %s3925_s0 = inlined_call_operand.vmem [shape: f32[2,3,256], index: 0, kind: input, shape index: {}]   ;;  %s3926_s1 = inlined_call_operand.vmem [shape: f32[8,27], index: 1, kind: input, shape index: {}]   ;;  %s3927_s2 = inlined_call_operand.vmem [shape: f32[8,1], index: 2, kind: input, shape index: {}]   ;;  %s3928_s3 = inlined_call_operand.vmem [shape: f32[8,72], index: 3, kind: input, shape index: {}]   ;;  %s3929_s4 = inlined_call_operand.vmem [shape: f32[8,1], index: 4, kind: input, shape index: {}]   ;;  %s3930_s5 = inlined_call_operand.vmem [shape: f32[16,72], index: 5, kind: input, shape index: {}]   ;;  %s3931_s6 = inlined_call_operand.vmem [shape: f32[16,1], index: 6, kind: input, shape index: {}]   ;;  %s3932_s7 = inlined_call_operand.vmem [shape: f32[16,144], index: 7, kind: input, shape index: {}]   ;;  %s3933_s8 = inlined_call_operand.vmem [shape: f32[16,1], index: 8, kind: input, shape index: {}]   ;;  %s3934_s9 = inlined_call_operand.vmem [shape: f32[256,64], index: 9, kind: input, shape index: {}]   ;;  %s3935_s10 = inlined_call_operand.vmem [shape: f32[1,64], index: 10, kind: input, shape index: {}]   ;;  %s3936_s11 = inlined_call_operand.vmem [shape: f32[64,64], index: 11, kind: input, shape index: {}]   ;;  %s3937_s12 = inlined_call_operand.vmem [shape: f32[1,64], index: 12, kind: input, shape index: {}]   ;;  %s3938_s13 = inlined_call_operand.vmem [shape: f32[64,10], index: 13, kind: input, shape index: {}]   ;;  %s3939_s14 = inlined_call_operand.vmem [shape: f32[1,10], index: 14, kind: input, shape index: {}]   ;;  %s3940_s15 = inlined_call_operand.vmem [shape: f32[256,64], index: 15, kind: input, shape index: {}]   ;;  %s3941_s16 = inlined_call_operand.vmem [shape: f32[64,256], index: 16, kind: input, shape index: {}]   ;;  %s3942_s17 = inlined_call_operand.vmem [shape: f32[16,256], index: 17, kind: input, shape index: {}]   ;;  %s3943_s18 = inlined_call_operand.hbm [shape: f32[2,1,10], index: 18, kind: output, shape index: {0}]   ;;  %s3944_s19 = inlined_call_operand.vmem [shape: f32[2,16,64], index: 19, kind: output, shape index: {1}]  }
   0x1   :  { %3976 = sst [smem:[#allocation15_spill]] %s3925_s0 }
   0x2   :  { %3977 = sst [smem:[#allocation16_spill]] %s3926_s1 }
   0x3   :  { %3978 = sst [smem:[#allocation17_spill]] %s3927_s2 }
   0x4   :  { %3979 = sst [smem:[#allocation18_spill]] %s3928_s3 }
   0x5   :  { %3980 = sst [smem:[#allocation19_spill]] %s3929_s4 }
   0x6   :  { %3981 = sst [smem:[#allocation20_spill]] %s3937_s12 }
   0x7   :  { %3982 = sst [smem:[#allocation21_spill]] %s3939_s14 }
   0x8   :  { %3983 = sst [smem:[#allocation22_spill]] %s3943_s18 }
   0x9   :  { %25 = vsyncpa [#allocation5], 0 }
   0xa   :  { %27 = vsyncpa [#allocation5 + $0x1], 0  ;;  %s3066_s0 = smov 0   ;;  %s3068_s30 = smov 0  }
   0xb   :  { %s3070_s20 = smov 0   ;;  %s3072_s21 = smov 0  }
   0xc LB: > { %3984 = sst [smem:[#allocation7_spill]] %s2926_s0  ;;  %s3087_s1 = sadd.s32 4294967295, %s2938_s21   ;;  %s2938_s21 = sphi %s3072_s21, %s4020_s21   ;;  %s2934_s20 = sphi %s3070_s20, %s4022_s20   ;;  %s2930_s30 = sphi %s3068_s30, %s4024_s30   ;;  %s2926_s0 = sphi %s3066_s0, %s4023_s0  }
   0xd   : > { %3985 = sst [smem:[#allocation8_spill]] %s2934_s20  ;;  %s2423_s22 = sadd.s32 4294967294, %s2938_s21  }
   0xe   : > { %3986 = sst [smem:[#allocation9_spill]] %s2938_s21  ;;  %s3091_s2 = sadd.s32 1, %s2938_s21  }
   0xf   : > { %3987 = sst [smem:[#allocation10_spill]] %s3087_s1  ;;  %s423_s23 = sadd.s32 1, %s2934_s20 }
  0x10   : > { %3988 = sst [smem:[#allocation11_spill]] %s3091_s2  ;;  %s420_s24 = ssub.s32 %s2938_s21, %s3091_s2 }
  0x11   : > { %p433_p0 = scmp.ne.s32.totalorder %s2934_s20, %s2930_s30  ;;  %p421_p1 = scmp.eq.s32.totalorder %s420_s24, 0 }
  0x12   : > { %p434_p2 = scmp.eq.s32.totalorder %s3087_s1, 1  ;;  %p439_p3 = scmp.ne.s32.totalorder %s2930_s30, %s2926_s0 }
  0x13   : > { %p440_p4 = scmp.eq.s32.totalorder %s2423_s22, 1  ;;  %p2426_p7 = scmp.ge.s32.totalorder %s2938_s21, 1 }
  0x14   : > { %s3102_s25 = scalar_select %p421_p1, %s2934_s20, %s423_s23  }
  0x15   : > { %p3104_p5 = por %p434_p2, %p433_p0  ;;  %p3108_p6 = por %p440_p4, %p439_p3 }
  0x16   : > { %3989 = sst [smem:[#allocation12_spill]] %s3102_s25  ;;  %p543_p8 = scmp.lt.s32.totalorder %s2938_s21, 3 }
  0x17   : > { %s3990_s3 = scalar_select %p3104_p5, 1, 0 }
  0x18   : > { %s3992_s26 = scalar_select %p3108_p6, 1, 0 }
  0x19   : > { %3991 = sst [smem:[#allocation13_spill]] %s3990_s3  ;;  %p544_p9 = pnand %p2426_p7, %p543_p8 }
  0x1a   : > { %3993 = sst [smem:[#allocation14_spill]] %s3992_s26  ;;  %p603_p10 = scmp.lt.s32.totalorder (!%p544_p9), %s3087_s1, 1  ;;  %v633_v0 = vlaneseq (!%p544_p9)  ;;  %vm614_vm0 = vcmask (!%p544_p9), 133120   ;;  %v2940_v1 = vmov (!%p544_p9), 0.0   ;;  %vm616_vm1 = vcmask (!%p544_p9), 272520  }
  0x1b   : > { %547 = sbr.rel (%p544_p9) target bundleno = 4118 (0x1016), region = 92  ;;  %615 = vst.msk [vmem:[#allocation2] sm:$0x7] (!%p544_p9), %vm614_vm0, %v2940_v1  ;;  %983 = vmatprep.mubr.f32.mxu1 (!%p544_p9), %v2940_v1  ;;  %s3994_s23 = sld [smem:[#allocation15_spill]] (!%p544_p9)  ;;  %vm629_vm6 = vcmask (!%p544_p9), 1042568   ;;  %vm624_vm7 = vcmask (!%p544_p9), 138240  }
  0x1c   : > { %v3121_v2 = vand.u32 (!%p544_p9), 127, %v633_v0  ;;  %617 = vst.msk [vmem:[#allocation2 + $0x10] sm:$0x7] (!%p544_p9), %vm616_vm1, %v2940_v1  ;;  %s3948_s25 = smov (!%p544_p9), 17   ;;  %s3946_s29 = smov (!%p544_p9), 18   ;;  %vm869_vm8 = vcmask (!%p544_p9), 277504  }
  0x1d   : > { %s3945_s22 = smov (!%p544_p9), 16   ;;  %vm683_vm9 = vcmask (!%p544_p9), 15360   ;;  %vm721_vm10 = vcmask (!%p544_p9), 130048   ;;  %vm777_vm11 = vcmask (!%p544_p9), 146432   ;;  %vm813_vm12 = vcmask (!%p544_p9), 261120   ;;  %s3996_s20 = sld [smem:[#allocation17_spill]] (!%p544_p9) }
  0x1e   : > { %v635_v3 = vadd.s32 (!%p544_p9), 128, %v3121_v2  ;;  %v636_v4 = vand.u32 (!%p544_p9), 15, %v3121_v2  ;;  %vm855_vm13 = vcmask (!%p544_p9), 777216   ;;  %vm667_vm14 = vcmask (!%p544_p9), 1039360   ;;  %s4003_s2 = smov (!%p544_p9), 96   ;;  %s4005_s26 = smov (!%p544_p9), 95  }
  0x1f   : > { %vm763_vm15 = vcmask (!%p544_p9), 908288   ;;  %vm741_vm1 = vcmask (!%p544_p9), 916480   ;;  %s4006_s4 = sld [smem:[#allocation19_spill]] (!%p544_p9)  ;;  %s4009_s0 = smov (!%p544_p9), 18  }
  0x20   : > { %v637_v6 = vand.u32 (!%p544_p9), 15, %v635_v3  ;;  %vm638_vm2 = vcmp.gt.s32.totalorder (!%p544_p9), %v636_v4, 0  ;;  %vm642_vm3 = vcmp.lt.s32.totalorder (!%p544_p9), %v636_v4, 15  ;;  %s2958_s21 = smov (!%p544_p9), 9   ;;  %s4010_s18 = smov (!%p544_p9), 16  }
  0x21   : > { %v644_v8 = vsel (!%p544_p9), %vm642_vm3, 1.0, %v2940_v1  ;;  %v3134_v10 = vsel (!%p544_p9), %vm638_vm2, 1.0, %v2940_v1  ;;  %vm797_vm2 = vcmask (!%p544_p9), 900096   ;;  %vm833_vm3 = vcmask (!%p544_p9), 785408   ;;  %s2962_s14 = smov (!%p544_p9), 118  }
  0x22   : > { %s3119_s27 = scalar_select %p603_p10, %s3087_s1, 1  ;;  %vm639_vm4 = vcmp.gt.s32.totalorder %v637_v6, 0  ;;  %vm643_vm5 = vcmp.lt.s32.totalorder %v637_v6, 15 }
  0x23   : > { %v645_v9 = vsel %vm643_vm5, 1.0, %v2940_v1  ;;  %v3137_v11 = vsel %vm639_vm4, 1.0, %v2940_v1  ;;  %vm886_vm4 = vcmask 769024   ;;  %vm912_vm5 = vcmask 1042432  }
  0x24   : > { %s2446_s28 = sshll.u32 %s3119_s27, 3  ;;  %v2843_v12 = vpack.i.bf16 %v645_v9, %v644_v8  ;;  %v2848_v13 = vpack.i.bf16 %v3137_v11, %v3134_v10 }
  0x25   : > { %s607_s24 = scalar_lea.vmem %s3994_s23, %s2446_s28  ;;  %s3947_s28 = smov 2  }
  0x26   : > { %v613_v5 = vld [vmem:[%s607_s24] sm:$0x77]  ;;  %2844 = vrot.lane.b32.xlu1 %v2843_v12, %s3947_s28  ;;  %s2945_s23 = smov 34   ;;  %s2946_s24 = smov 32  }
  0x27   : > { %620 = vrot.lane.b32.xlu0 %v613_v5, %s3948_s25  ;;  %v619_v7 = vcombine.high %v613_v5, %v613_v5  ;;  %s3958_s28 = smov 126  }
  0x2a   : > { %2849 = vrot.lane.b32.xlu1 %v2848_v13, %s3945_s22  ;;  %s3956_s22 = smov 112  }
  0x2b   : > { %622 = vrot.lane.b32.xlu0 %v619_v7, %s3948_s25  ;;  %s3967_s25 = smov 95  }
  0x2e   : > { %2859 = vrot.lane.b32.xlu1 %v2848_v13, %s2946_s24  ;;  %s3952_s24 = smov 127  }
  0x2f   : > { %2854 = vrot.lane.b32.xlu0 %v2843_v12, %s3946_s29  ;;  %s3950_s29 = smov 110  }
  0x33   : > { %2864 = vrot.lane.b32.xlu0 %v2843_v12, %s2945_s23  ;;  %s3954_s23 = smov 111  }
  0x98   : > { %v2845_v17 = vpop.permute.xlu1 %2844 }
  0x99   : > { %v621_v14 = vpop.permute.xlu0 %620  ;;  %v3166_v36 = vunpack.i.l.bf16 %v2845_v17  ;;  %v3187_v60 = vunpack.i.h.bf16 %v2845_v17 }
  0x9a   : > { %630 = vst.msk [vmem:[#allocation2] sm:$0x7] %vm629_vm6, %v621_v14  ;;  %vm2956_vm6 = vmmov 1  }
  0x9c   : > { %v2850_v22 = vpop.permute.xlu1 %2849 }
  0x9d   : > { %v623_v15 = vpop.permute.xlu0 %622  ;;  %v3152_v26 = vunpack.i.l.bf16 %v2850_v22  ;;  %v3191_v63 = vunpack.i.h.bf16 %v2850_v22 }
  0x9e   : > { %v625_v16 = vsel %vm624_vm7, %v621_v14, %v623_v15  ;;  %632 = vst.msk [vmem:[#allocation2 + $0x10] sm:$0x7] %vm614_vm0, %v623_v15  ;;  %v3204_v14 = vsel %vm683_vm9, %v3166_v36, %v3187_v60  ;;  %vm703_vm0 = vcmask 1031168   ;;  %vm908_vm9 = vcmask 220160  }
  0x9f   : > { %631 = vst [vmem:[#allocation2 + $0x8] sm:$0x7] %v625_v16 }
  0xa0   : > { %v2860_v53 = vpop.permute.xlu1 %2859 }
  0xa1   : > { %v646_v18 = vld [vmem:[#allocation2] sm:$0x7]  ;;  %v3147_v19 = vpop.permute.xlu0 %2854  ;;  %v3181_v56 = vunpack.i.h.bf16 %v2860_v53 }
  0xa2   : > { %v748_v20 = vld [vmem:[#allocation2] sm:$0x7]  ;;  %v3150_v25 = vunpack.i.l.bf16 %v3147_v19  ;;  %v648_v30 = vmul.f32 %v646_v18, %v3134_v10  ;;  %v3199_v9 = vunpack.i.h.bf16 %v3147_v19  ;;  %v3214_v19 = vunpack.i.l.bf16 %v2860_v53 }
  0xa3   : > { %v652_v21 = vld [vmem:[#allocation2] sm:$0x7]  ;;  %v754_v23 = vrot.slane %v748_v20, 4  ;;  %v3211_v20 = vsel %vm721_vm10, %v3152_v26, %v3191_v63 }
  0xa4   : > { %v658_v24 = vrot.slane %v652_v21, 5  ;;  %v712_v27 = vld [vmem:[#allocation2] sm:$0x7]  ;;  %650 = vst [vmem:[#allocation3] sm:$0x7] %v648_v30 }
  0xa5   : > { %v770_v28 = vld [vmem:[#allocation2] sm:$0x7]  ;;  %757 = vrot.lane.b32.xlu0 %v754_v23, %s3954_s23  ;;  %v654_v34 = vld [vmem:[#allocation2 + $0x10] sm:$0x7]  ;;  %v726_v35 = vmul.f32 %v3152_v26, %v712_v27  ;;  %v2865_v44 = vpop.permute.xlu0 %2864 }
  0xa6   : > { %v674_v29 = vld [vmem:[#allocation2] sm:$0x7]  ;;  %661 = vrot.lane.b32.xlu1 %v658_v24, %s3952_s24  ;;  %v660_v37 = vrot.slane %v654_v34, 5  ;;  %v750_v39 = vld [vmem:[#allocation2 + $0x10] sm:$0x7]  ;;  %v782_v40 = vmul.f32 %v3150_v25, %v770_v28  ;;  %v3174_v48 = vunpack.i.h.bf16 %v2865_v44  ;;  %v3176_v49 = vunpack.i.l.bf16 %v2865_v44 }
  0xa7   : > { %v3157_v31 = vld [vmem:[#allocation2] sm:$0x7]  ;;  %v732_v38 = vrot.slane %v726_v35, 7  ;;  %v756_v41 = vrot.slane %v750_v39, 4  ;;  %v688_v42 = vmul.f32 %v3166_v36, %v674_v29  ;;  %v842_v45 = vld [vmem:[#allocation2 + $0x10] sm:$0x7]  ;;  %v3221_v28 = vsel %vm777_vm11, %v3150_v25, %v3199_v9 }
  0xa8   : > { %v3159_v32 = vld [vmem:[#allocation2] sm:$0x7]  ;;  %v788_v43 = vrot.slane %v782_v40, 1  ;;  %v647_v46 = vld [vmem:[#allocation2 + $0x8] sm:$0x7]  ;;  %v848_v50 = vrot.slane %v842_v45, 3  ;;  %v3185_v58 = vsel %vm869_vm8, %v3176_v49, %v3174_v48  ;;  %v818_v30 = vmul.f32 %v3214_v19, %v3157_v31  ;;  %vm2611_vm8 = vmpackc.low %vm912_vm5, %vm2956_vm6 }
  0xa9   : > { %v3161_v33 = vld [vmem:[#allocation2] sm:$0x7]  ;;  %665 = vrot.lane.b32.xlu0 %v660_v37, %s3952_s24  ;;  %v694_v47 = vrot.slane %v688_v42, 2  ;;  %v841_v51 = vld [vmem:[#allocation2 + $0x8] sm:$0x7]  ;;  %v649_v52 = vmul.f32 %v647_v46, %v3137_v11  ;;  %v3229_v37 = vsel %vm813_vm12, %v3214_v19, %v3181_v56  ;;  %v874_v44 = vmul.f32 %v3176_v49, %v3159_v32 }
  0xaa   : > { %992 = vst.msk [vmem:[#allocation2] sm:$0xff] %vm624_vm7, %v2940_v1  ;;  %735 = vrot.lane.b32.xlu1 %v732_v38, %s3956_s22  ;;  %v653_v54 = vld [vmem:[#allocation2 + $0x8] sm:$0x7]  ;;  %v847_v55 = vrot.slane %v841_v51, 3  ;;  %v676_v59 = vld [vmem:[#allocation2 + $0x10] sm:$0x7] }
  0xab   : > { %651 = vst [vmem:[#allocation3 + $0x8] sm:$0x7] %v649_v52  ;;  %v659_v57 = vrot.slane %v653_v54, 5  ;;  %v749_v61 = vld [vmem:[#allocation2 + $0x8] sm:$0x7]  ;;  %v690_v3 = vmul.f32 %v3187_v60, %v676_v59  ;;  %v824_v39 = vrot.slane %v818_v30, 6 }
  0xac   : > { %v863_v62 = vld [vmem:[#allocation2 + $0x8] sm:$0x7]  ;;  %v808_v4 = vld [vmem:[#allocation2 + $0x10] sm:$0x7]  ;;  %v755_v5 = vrot.slane %v749_v61, 4  ;;  %v846_v45 = vrot.slane %v3161_v33, 3 }
  0xad   : > { %761 = vrot.lane.b32.xlu0 %v756_v41, %s3954_s23  ;;  %v875_v0 = vmul.f32 %v3185_v58, %v863_v62  ;;  %v820_v6 = vmul.f32 %v3181_v56, %v808_v4  ;;  %v714_v7 = vld [vmem:[#allocation2 + $0x10] sm:$0x7]  ;;  %v675_v8 = vld [vmem:[#allocation2 + $0x8] sm:$0x7]  ;;  %v696_v12 = vrot.slane %v690_v3, 2  ;;  %v902_v46 = vld [vmem:[%s3996_s20] sm:$0xff] }
  0xae   : > { %791 = vrot.lane.b32.xlu1 %v788_v43, %s3950_s29  ;;  %s3961_s29 = smov 94   ;;  %v728_v13 = vmul.f32 %v3191_v63, %v714_v7  ;;  %v689_v16 = vmul.f32 %v3204_v14, %v675_v8  ;;  %v772_v17 = vld [vmem:[#allocation2 + $0x10] sm:$0x7]  ;;  %v713_v18 = vld [vmem:[#allocation2 + $0x8] sm:$0x7]  ;;  %vm993_vm11 = vcmask 277640  }
  0xaf   : > { %v826_v15 = vrot.slane %v820_v6, 6  ;;  %v784_v22 = vmul.f32 %v3199_v9, %v772_v17  ;;  %v727_v24 = vmul.f32 %v3211_v20, %v713_v18  ;;  %v771_v27 = vld [vmem:[#allocation2 + $0x8] sm:$0x7]  ;;  %v864_v42 = vld [vmem:[#allocation2 + $0x10] sm:$0x7]  ;;  %vm1005_vm12 = vcmask 1047688  }
  0xb0   : > { %v734_v21 = vrot.slane %v728_v13, 7  ;;  %v695_v23 = vrot.slane %v689_v16, 2  ;;  %v783_v35 = vmul.f32 %v3221_v28, %v771_v27  ;;  %v807_v38 = vld [vmem:[#allocation2 + $0x8] sm:$0x7]  ;;  %v876_v43 = vmul.f32 %v3174_v48, %v864_v42  ;;  %994 = vst.msk [vmem:[#allocation2 + $0x10] sm:$0xff] %vm993_vm11, %v2940_v1  ;;  %s3999_s20 = smov 111  }
  0xb1   : > { %697 = vrot.lane.b32.xlu0 %v694_v47, %s3958_s28  ;;  %v790_v29 = vrot.slane %v784_v22, 1  ;;  %v733_v34 = vrot.slane %v727_v24, 7  ;;  %v819_v40 = vmul.f32 %v3229_v37, %v807_v38  ;;  %v2955_v47 = vmov 0  }
  0xb2   : > { %853 = vrot.lane.b32.xlu1 %v848_v50, %s3967_s25  ;;  %v789_v41 = vrot.slane %v783_v35, 1  ;;  %2869 = vset.pattern.permute.xlu0 %v2955_v47 }
  0xb3   : > { %v825_v31 = vrot.slane %v819_v40, 6  ;;  %2868 = vset.pattern.permute.xlu1 %v2955_v47 }
  0xb5   : > { %851 = vrot.lane.b32.xlu0 %v847_v55, %s3967_s25 }
  0xb6   : > { %663 = vrot.lane.b32.xlu1 %v659_v57, %s3952_s24  ;;  %s3963_s24 = smov 96  }
  0xb9   : > { %882 = vrot.lane.b32.xlu0 %v875_v0, %s3961_s29 }
  0xba   : > { %759 = vrot.lane.b32.xlu1 %v755_v5, %s3954_s23  ;;  %s3995_s23 = smov 110  }
  0xbd   : > { %701 = vrot.lane.b32.xlu0 %v696_v12, %s3958_s28 }
  0xbe   : > { %831 = vrot.lane.b32.xlu1 %v826_v15, %s3963_s24 }
  0xc1   : > { %739 = vrot.lane.b32.xlu0 %v734_v21, %s3956_s22 }
  0xc2   : > { %699 = vrot.lane.b32.xlu1 %v695_v23, %s3958_s28  ;;  %s4000_s28 = smov 127  }
  0xc5   : > { %795 = vrot.lane.b32.xlu0 %v790_v29, %s3995_s23 }
  0xc6   : > { %737 = vrot.lane.b32.xlu1 %v733_v34, %s3956_s22  ;;  %s3997_s22 = sld [smem:[#allocation16_spill]] }
  0xc9   : > { %827 = vrot.lane.b32.xlu0 %v824_v39, %s3963_s24 }
  0xca   : > { %793 = vrot.lane.b32.xlu1 %v789_v41, %s3995_s23 }
  0xcd   : > { %829 = vrot.lane.b32.xlu0 %v825_v31, %s3963_s24  ;;  %s4002_s24 = smov 112  }
  0xce   : > { %884 = vrot.lane.b32.xlu1 %v876_v43, %s3961_s29 }
  0xd1   : > { %880 = vrot.lane.b32.xlu0 %v874_v44, %s3961_s29  ;;  %s3998_s29 = smov 17  }
  0xd2   : > { %849 = vrot.lane.b32.xlu1 %v846_v45, %s3967_s25 }
  0xd6   : > { %905 = vperm.xlu1 %2868, %v902_v46  }
 0x117   : > { %v758_v50 = vpop.permute.xlu0 %757 }
 0x118   : > { %v662_v51 = vpop.permute.xlu1 %661 }
 0x11b   : > { %v666_v52 = vpop.permute.xlu0 %665 }
 0x11c   : > { %v736_v53 = vpop.permute.xlu1 %735 }
 0x11f   : > { %v762_v54 = vpop.permute.xlu0 %761 }
 0x120   : > { %v792_v32 = vpop.permute.xlu1 %791 }
 0x123   : > { %v698_v55 = vpop.permute.xlu0 %697 }
 0x124   : > { %v854_v33 = vpop.permute.xlu1 %853 }
 0x127   : > { %v852_v57 = vpop.permute.xlu0 %851 }
 0x128   : > { %v857_v59 = vsel %vm855_vm13, %v852_v57, %v854_v33  ;;  %v664_v61 = vpop.permute.xlu1 %663  ;;  %v893_v33 = vld [vmem:[%s3997_s22] sm:$0xff]  ;;  %s4001_s22 = smov 126  }
 0x129   : > { %861 = vst [vmem:[#allocation3 + $0x28] sm:$0xe0] %v857_v59  ;;  %v668_v62 = vsel %vm667_vm14, %v662_v51, %v664_v61  ;;  %v669_v0 = vsel %vm667_vm14, %v664_v61, %v666_v52 }
 0x12a   : > { %672 = vst [vmem:[#allocation3] sm:$0x38] %v668_v62  ;;  %673 = vst [vmem:[#allocation3 + $0x8] sm:$0x38] %v669_v0 }
 0x12b   : > { %v883_v3 = vpop.permute.xlu0 %882 }
 0x12c   : > { %v760_v4 = vpop.permute.xlu1 %759 }
 0x12d   : > { %v764_v5 = vsel %vm763_vm15, %v758_v50, %v760_v4  ;;  %v765_v6 = vsel %vm763_vm15, %v760_v4, %v762_v54 }
 0x12e   : > { %768 = vst [vmem:[#allocation3 + $0x10] sm:$0x70] %v764_v5  ;;  %769 = vst [vmem:[#allocation3 + $0x18] sm:$0x70] %v765_v6 }
 0x12f   : > { %v702_v7 = vpop.permute.xlu0 %701 }
 0x130   : > { %v832_v8 = vpop.permute.xlu1 %831 }
 0x133   : > { %v740_v12 = vpop.permute.xlu0 %739 }
 0x134   : > { %v700_v13 = vpop.permute.xlu1 %699 }
 0x135   : > { %v704_v15 = vsel %vm703_vm0, %v698_v55, %v700_v13  ;;  %v705_v16 = vsel %vm703_vm0, %v700_v13, %v702_v7 }
 0x136   : > { %708 = vst [vmem:[#allocation3 + $0x10] ss:$-12 sps:$4 sm:$0xc1] %v704_v15   ;;  %709 = vst [vmem:[#allocation3 + $0x18] ss:$-12 sps:$4 sm:$0xc1] %v705_v16  }
 0x137   : > { %v796_v17 = vpop.permute.xlu0 %795 }
 0x138   : > { %v738_v18 = vpop.permute.xlu1 %737 }
 0x139   : > { %v742_v21 = vsel %vm741_vm1, %v736_v53, %v738_v18  ;;  %v743_v22 = vsel %vm741_vm1, %v738_v18, %v740_v12 }
 0x13a   : > { %746 = vst [vmem:[#allocation3 + $0x10] sm:$0xe] %v742_v21  ;;  %747 = vst [vmem:[#allocation3 + $0x18] sm:$0xe] %v743_v22 }
 0x13b   : > { %v828_v23 = vpop.permute.xlu0 %827 }
 0x13c   : > { %v794_v24 = vpop.permute.xlu1 %793 }
 0x13d   : > { %v798_v27 = vsel %vm797_vm2, %v792_v32, %v794_v24  ;;  %v799_v29 = vsel %vm797_vm2, %v794_v24, %v796_v17  ;;  %v895_v31 = vld [vmem:[#allocation3 + $0x8] sm:$0xff]  ;;  %v894_v45 = vld [vmem:[#allocation3] sm:$0xff] }
 0x13e   : > { %802 = vst [vmem:[#allocation3 + $0x20] ss:$-12 sps:$4 sm:$0x83] %v798_v27   ;;  %803 = vst [vmem:[#allocation3 + $0x28] ss:$-12 sps:$4 sm:$0x83] %v799_v29  }
 0x13f   : > { %v830_v30 = vpop.permute.xlu0 %829 }
 0x140   : > { %v834_v34 = vsel %vm833_vm3, %v828_v23, %v830_v30  ;;  %v835_v35 = vsel %vm833_vm3, %v830_v30, %v832_v8  ;;  %v885_v38 = vpop.permute.xlu1 %884 }
 0x141   : > { %838 = vst [vmem:[#allocation3 + $0x20] sm:$0x1c] %v834_v34  ;;  %839 = vst [vmem:[#allocation3 + $0x28] sm:$0x1c] %v835_v35  ;;  %v888_v39 = vsel %vm886_vm4, %v883_v3, %v885_v38 }
 0x142   : > { %892 = vst [vmem:[#allocation3 + $0x38] sm:$0x7] %v888_v39 }
 0x143   : > { %v881_v40 = vpop.permute.xlu0 %880 }
 0x144   : > { %v887_v41 = vsel %vm886_vm4, %v881_v40, %v883_v3  ;;  %v850_v42 = vpop.permute.xlu1 %849 }
 0x145   : > { %891 = vst [vmem:[#allocation3 + $0x30] sm:$0x7] %v887_v41  ;;  %v856_v43 = vsel %vm855_vm13, %v850_v42, %v852_v57  ;;  %v897_v44 = vld [vmem:[#allocation3 + $0x18] sm:$0xff]  ;;  %v896_v46 = vld [vmem:[#allocation3 + $0x10] sm:$0xff] }
 0x146   : > { %860 = vst [vmem:[#allocation3 + $0x20] sm:$0xe0] %v856_v43  ;;  %v2606_v47 = vpack.c.bf16 %v897_v44, %v895_v31  ;;  %v2608_v50 = vpack.c.bf16 %v896_v46, %v894_v45 }
 0x148   : > { %2607 = vmatprep.subr.bf16.mxu1 %v2606_v47  ;;  %v899_v51 = vld [vmem:[#allocation3 + $0x28] sm:$0xff] }
 0x149   : > { %2609 = vmatpush1.bf16.msra.mxu1 %v2608_v50  ;;  %v901_v52 = vld [vmem:[#allocation3 + $0x38] sm:$0x7] }
 0x14a   : > { %v2610_v53 = vpack.c.bf16 %v901_v52, %v899_v51 }
 0x14c   : > { %2612 = vmatprep.subr.msk.bf16.mxu1 %vm2611_vm8, %v2610_v53  ;;  %v900_v54 = vld [vmem:[#allocation3 + $0x30] sm:$0x7] }
 0x14d   : > { %v898_v32 = vld [vmem:[#allocation3 + $0x20] sm:$0xff] }
 0x14e   : > { %v2613_v55 = vpack.c.bf16 %v900_v54, %v898_v32 }
 0x150   : > { %2615 = vmatpush1.bf16.msk.msra.mxu1 %vm2611_vm8, %v2613_v55 }
 0x153   : > { %2433 = vmatmul.mubr.msk.f32.vlgmr.msra.gmra.mrb[0].mxu1 %vm908_vm9, %v893_v33 }
 0x154   : > { %1267 = vmatprep.mubr.f32.mxu1 %v2940_v1 }
 0x155   : > { %v906_v57 = vpop.permute.xlu1 %905 }
 0x226   : > { %v985_v59 = vpop.f32.mrb[0].mxu1 }
 0x227   : > { %v986_v61 = vadd.f32 %v985_v59, %v906_v57  ;;  %v987_v62 = vpop.f32.mrb[1].mxu1 }
 0x228   : > { %v988_v0 = vadd.f32 %v987_v62, %v906_v57 }
 0x229   : > { %v990_v3 = vmax.f32 %v986_v61, 0.0 }
 0x22a   : > { %v991_v4 = vmax.f32 %v988_v0, 0.0 }
 0x22b   : > { %997 = vrot.lane.b32.xlu0 %v990_v3, %s3998_s29 }
 0x22c   : > { %999 = vrot.lane.b32.xlu1 %v991_v4, %s3998_s29 }
 0x29d   : > { %v998_v5 = vpop.permute.xlu0 %997 }
 0x29e   : > { %1006 = vst.msk [vmem:[#allocation2] sm:$0xff] %vm1005_vm12, %v998_v5  ;;  %v1000_v6 = vpop.permute.xlu1 %999 }
 0x29f   : > { %v1001_v7 = vsel %vm624_vm7, %v998_v5, %v1000_v6  ;;  %1008 = vst.msk [vmem:[#allocation2 + $0x10] sm:$0xff] %vm624_vm7, %v1000_v6 }
 0x2a0   : > { %v3275_v8 = vmul.f32 %v1001_v7, %v3137_v11 }
 0x2a2   : > { %1014 = vst [vmem:[#allocation3 + $0x8] sm:$0xff] %v3275_v8 }
 0x2a5   : > { %v1009_v12 = vld [vmem:[#allocation2] sm:$0xff] }
 0x2a6   : > { %v3279_v13 = vmul.f32 %v1009_v12, %v3134_v10  ;;  %1081 = vrot.lane.b32.xlu1 %v1009_v12, %s3999_s20  ;;  %1021 = vrot.lane.b32.xlu0 %v1009_v12, %s4000_s28  ;;  %v1017_v15 = vld [vmem:[#allocation2 + $0x10] sm:$0xff]  ;;  %1276 = vst.msk [vmem:[#allocation2] sm:$0xff] %vm624_vm7, %v2940_v1  ;;  %v1036_v10 = vmul.f32 %v3166_v36, %v1009_v12 }
 0x2a7   : > { %1277 = vst.msk [vmem:[#allocation2 + $0x10] sm:$0xff] %vm993_vm11, %v2940_v1  ;;  %v1057_v11 = vmul.f32 %v3152_v26, %v1009_v12  ;;  %v1117_v16 = vmul.f32 %v3214_v19, %v1009_v12  ;;  %v1096_v17 = vmul.f32 %v3150_v25, %v1009_v12  ;;  %v1037_v36 = vmul.f32 %v1001_v7, %v3204_v14 }
 0x2a8   : > { %1013 = vst [vmem:[#allocation3] sm:$0xff] %v3279_v13  ;;  %v1038_v18 = vmul.f32 %v3187_v60, %v1017_v15  ;;  %v1058_v26 = vmul.f32 %v1001_v7, %v3211_v20  ;;  %v1059_v21 = vmul.f32 %v3191_v63, %v1017_v15  ;;  %v1097_v25 = vmul.f32 %v1001_v7, %v3221_v28 }
 0x2a9   : > { %v1098_v19 = vmul.f32 %v3199_v9, %v1017_v15  ;;  %v1118_v60 = vmul.f32 %v1001_v7, %v3229_v37  ;;  %v1119_v14 = vmul.f32 %v3181_v56, %v1017_v15  ;;  %v1157_v63 = vmul.f32 %v1001_v7, %v3185_v58  ;;  %v1193_v56 = vld [vmem:[%s4006_s4] sm:$0xff]  ;;  %s2959_s4 = smov 8  }
 0x2aa   : > { %1025 = vrot.lane.b32.xlu1 %v1017_v15, %s4000_s28  ;;  %1085 = vrot.lane.b32.xlu0 %v1017_v15, %s3999_s20  ;;  %v1156_v9 = vmul.f32 %v3176_v49, %v1009_v12  ;;  %v1158_v20 = vmul.f32 %v3174_v48, %v1017_v15 }
 0x2ae   : > { %1042 = vrot.lane.b32.xlu1 %v1036_v10, %s4001_s22  ;;  %1145 = vrot.lane.b32.xlu0 %v1017_v15, %s3967_s25 }
 0x2b2   : > { %1083 = vrot.lane.b32.xlu1 %v1001_v7, %s3999_s20  ;;  %1023 = vrot.lane.b32.xlu0 %v1001_v7, %s4000_s28 }
 0x2b6   : > { %1143 = vrot.lane.b32.xlu1 %v1001_v7, %s3967_s25  ;;  %1063 = vrot.lane.b32.xlu0 %v1057_v11, %s4002_s24  ;;  %s4004_s25 = smov 94  }
 0x2ba   : > { %1123 = vrot.lane.b32.xlu1 %v1117_v16, %s4003_s2  ;;  %1102 = vrot.lane.b32.xlu0 %v1096_v17, %s3995_s23 }
 0x2be   : > { %1044 = vrot.lane.b32.xlu1 %v1037_v36, %s4001_s22  ;;  %1046 = vrot.lane.b32.xlu0 %v1038_v18, %s4001_s22 }
 0x2c2   : > { %1065 = vrot.lane.b32.xlu1 %v1058_v26, %s4002_s24  ;;  %1067 = vrot.lane.b32.xlu0 %v1059_v21, %s4002_s24 }
 0x2c6   : > { %1104 = vrot.lane.b32.xlu1 %v1097_v25, %s3995_s23  ;;  %1106 = vrot.lane.b32.xlu0 %v1098_v19, %s3995_s23 }
 0x2ca   : > { %1125 = vrot.lane.b32.xlu1 %v1118_v60, %s4003_s2  ;;  %1127 = vrot.lane.b32.xlu0 %v1119_v14, %s4003_s2  ;;  %s4007_s2 = sld [smem:[#allocation18_spill]] }
 0x2ce   : > { %1164 = vrot.lane.b32.xlu1 %v1157_v63, %s4004_s25  ;;  %1141 = vrot.lane.b32.xlu0 %v1009_v12, %s4005_s26 }
 0x2d0   : > { %v1174_v16 = vld [vmem:[%s4007_s2] sm:$0xff]  ;;  %s2960_s2 = smov 120  }
 0x2d2   : > { %1162 = vrot.lane.b32.xlu1 %v1156_v9, %s4004_s25  ;;  %1166 = vrot.lane.b32.xlu0 %v1158_v20, %s4004_s25  ;;  %s2957_s25 = smov 10  }
 0x2d6   : > { %1196 = vperm.xlu0 %2869, %v1193_v56  }
 0x318   : > { %v1082_v28 = vpop.permute.xlu1 %1081  ;;  %v1022_v37 = vpop.permute.xlu0 %1021 }
 0x31c   : > { %v1026_v58 = vpop.permute.xlu1 %1025  ;;  %v1086_v22 = vpop.permute.xlu0 %1085 }
 0x320   : > { %v1043_v23 = vpop.permute.xlu1 %1042  ;;  %v1146_v24 = vpop.permute.xlu0 %1145 }
 0x324   : > { %v1084_v27 = vpop.permute.xlu1 %1083  ;;  %v1024_v29 = vpop.permute.xlu0 %1023 }
 0x325   : > { %v1087_v49 = vsel %vm763_vm15, %v1082_v28, %v1084_v27  ;;  %v1088_v48 = vsel %vm763_vm15, %v1084_v27, %v1086_v22  ;;  %v1027_v30 = vsel %vm667_vm14, %v1022_v37, %v1024_v29  ;;  %v1028_v34 = vsel %vm667_vm14, %v1024_v29, %v1026_v58  ;;  %v1357_v27 = vld [vmem:[%s3940_s15 + $0x88] sm:$0xff]  ;;  %v1340_v29 = vld [vmem:[%s3940_s15] sm:$0xff] }
 0x326   : > { %1091 = vst [vmem:[#allocation3 + $0x40] sm:$0xff] %v1087_v49  ;;  %1031 = vst [vmem:[#allocation3 + $0x10] sm:$0xff] %v1027_v30  ;;  %v2616_v35 = vpack.c.bf16 %v1028_v34, %v3275_v8  ;;  %v2618_v38 = vpack.c.bf16 %v1027_v30, %v3279_v13  ;;  %vm1199_vm14 = vcmask 588800   ;;  %vm1442_vm15 = vcmask 72704   ;;  %v1341_v30 = vld [vmem:[%s3940_s15 + $0x8] sm:$0xff] }
 0x327   : > { %1032 = vst [vmem:[#allocation3 + $0x18] sm:$0xff] %v1028_v34  ;;  %1638 = vst.msk [vmem:[#allocation2 + $0x18] sm:$0xff] %vm1442_vm15, %v2940_v1  ;;  %v1358_v34 = vld [vmem:[%s3940_s15 + $0x90] sm:$0xff] }
 0x328   : > { %v1144_v39 = vpop.permute.xlu1 %1143  ;;  %v1064_v40 = vpop.permute.xlu0 %1063  ;;  %2617 = vmatprep.subr.bf16.mxu1 %v2616_v35  ;;  %v1359_v35 = vld [vmem:[%s3940_s15 + $0x98] sm:$0xff] }
 0x329   : > { %v1148_v41 = vsel %vm855_vm13, %v1144_v39, %v1146_v24  ;;  %2619 = vmatpush1.bf16.msra.mxu1 %v2618_v38  ;;  %v1356_v24 = vld [vmem:[%s3940_s15 + $0x80] sm:$0xff]  ;;  %v2634_v38 = vpack.c.bf16 %v1341_v30, %v1340_v29  ;;  %v1452_v29 = vand.u32 7, %v3121_v2 }
 0x32c   : > { %v1124_v42 = vpop.permute.xlu1 %1123  ;;  %v1103_v31 = vpop.permute.xlu0 %1102 }
 0x330   : > { %v1045_v43 = vpop.permute.xlu1 %1044  ;;  %v1047_v44 = vpop.permute.xlu0 %1046 }
 0x331   : > { %v1048_v45 = vsel %vm703_vm0, %v1043_v23, %v1045_v43  ;;  %v1049_v46 = vsel %vm703_vm0, %v1045_v43, %v1047_v44  ;;  %vm1444_vm0 = vcmask 671304  }
 0x332   : > { %1052 = vst [vmem:[#allocation3 + $0x20] sm:$0xff] %v1048_v45  ;;  %1053 = vst [vmem:[#allocation3 + $0x28] sm:$0xff] %v1049_v46 }
 0x333   : > { %1640 = vst.msk [vmem:[#allocation2 + $0x18] sm:$0xff] %vm1444_vm0, %v2940_v1 }
 0x334   : > { %v1066_v47 = vpop.permute.xlu1 %1065  ;;  %v1068_v50 = vpop.permute.xlu0 %1067 }
 0x335   : > { %v1069_v51 = vsel %vm741_vm1, %v1064_v40, %v1066_v47  ;;  %v1070_v52 = vsel %vm741_vm1, %v1066_v47, %v1068_v50  ;;  %v1342_v40 = vld [vmem:[%s3940_s15 + $0x10] sm:$0xff]  ;;  %v1363_v50 = vld [vmem:[%s3940_s15 + $0xb8] sm:$0xff]  ;;  %vm1450_vm1 = vcmask 597064  }
 0x336   : > { %1073 = vst [vmem:[#allocation3 + $0x30] sm:$0xff] %v1069_v51  ;;  %1074 = vst [vmem:[#allocation3 + $0x38] sm:$0xff] %v1070_v52  ;;  %v2620_v53 = vpack.c.bf16 %v1070_v52, %v1049_v46  ;;  %v2622_v54 = vpack.c.bf16 %v1069_v51, %v1048_v45  ;;  %v1344_v45 = vld [vmem:[%s3940_s15 + $0x20] sm:$0xff]  ;;  %v1345_v46 = vld [vmem:[%s3940_s15 + $0x28] sm:$0xff] }
 0x337   : > { %v1362_v47 = vld [vmem:[%s3940_s15 + $0xb0] sm:$0xff]  ;;  %v2642_v51 = vpack.c.bf16 %v1345_v46, %v1344_v45 }
 0x338   : > { %v1105_v32 = vpop.permute.xlu1 %1104  ;;  %v1107_v55 = vpop.permute.xlu0 %1106  ;;  %2621 = vmatprep.subr.bf16.mxu1 %v2620_v53  ;;  %v2644_v52 = vpack.c.bf16 %v1363_v50, %v1362_v47  ;;  %v1346_v53 = vld [vmem:[%s3940_s15 + $0x30] sm:$0xff]  ;;  %v1542_v50 = vld [vmem:[%s3931_s6] sm:$0xff] }
 0x339   : > { %v1108_v33 = vsel %vm797_vm2, %v1103_v31, %v1105_v32  ;;  %v1109_v57 = vsel %vm797_vm2, %v1105_v32, %v1107_v55  ;;  %2623 = vmatpush1.bf16.msra.mxu1 %v2622_v54  ;;  %v1361_v31 = vld [vmem:[%s3940_s15 + $0xa8] sm:$0xff]  ;;  %v1347_v54 = vld [vmem:[%s3940_s15 + $0x38] sm:$0xff]  ;;  %v1364_v32 = vld [vmem:[%s3940_s15 + $0xc0] sm:$0xff] }
 0x33a   : > { %1112 = vst [vmem:[#allocation3 + $0x50] sm:$0xff] %v1108_v33  ;;  %v2624_v59 = vpack.c.bf16 %v1109_v57, %v1088_v48  ;;  %v2626_v61 = vpack.c.bf16 %v1108_v33, %v1087_v49  ;;  %v2632_v48 = vpack.c.bf16 %v1357_v27, %v1356_v24  ;;  %v1365_v55 = vld [vmem:[%s3940_s15 + $0xc8] sm:$0xff]  ;;  %v2646_v33 = vpack.c.bf16 %v1347_v54, %v1346_v53 }
 0x33b   : > { %v2648_v57 = vpack.c.bf16 %v1365_v55, %v1364_v32 }
 0x33c   : > { %v1126_v62 = vpop.permute.xlu1 %1125  ;;  %v1128_v0 = vpop.permute.xlu0 %1127  ;;  %2625 = vmatprep.subr.bf16.mxu1 %v2624_v59  ;;  %2633 = vmatprep.subr.bf16.mxu0 %v2632_v48  ;;  %v1348_v59 = vld [vmem:[%s3940_s15 + $0x40] sm:$0xff] }
 0x33d   : > { %v1129_v3 = vsel %vm833_vm3, %v1124_v42, %v1126_v62  ;;  %v1130_v4 = vsel %vm833_vm3, %v1126_v62, %v1128_v0  ;;  %2627 = vmatpush1.bf16.msra.mxu1 %v2626_v61  ;;  %v1360_v42 = vld [vmem:[%s3940_s15 + $0xa0] sm:$0xff]  ;;  %2635 = vmatpush3.bf16.msra.mxu0 %v2634_v38  ;;  %v1349_v61 = vld [vmem:[%s3940_s15 + $0x48] sm:$0xff]  ;;  %v1366_v62 = vld [vmem:[%s3940_s15 + $0xd0] sm:$0xff]  ;;  %vm2320_vm3 = vcmask 73728  }
 0x33e   : > { %1133 = vst [vmem:[#allocation3 + $0x60] sm:$0xff] %v1129_v3  ;;  %v2628_v5 = vpack.c.bf16 %v1148_v41, %v1130_v4  ;;  %v1343_v41 = vld [vmem:[%s3940_s15 + $0x18] sm:$0xff]  ;;  %v2640_v44 = vpack.c.bf16 %v1361_v31, %v1360_v42 }
 0x33f   : > { %v2638_v43 = vpack.c.bf16 %v1343_v41, %v1342_v40  ;;  %v1367_v0 = vld [vmem:[%s3940_s15 + $0xd8] sm:$0xff] }
 0x340   : > { %v1165_v6 = vpop.permute.xlu1 %1164  ;;  %v1142_v7 = vpop.permute.xlu0 %1141  ;;  %2629 = vmatprep.subr.bf16.mxu1 %v2628_v5  ;;  %v2652_v4 = vpack.c.bf16 %v1367_v0, %v1366_v62  ;;  %v1350_v5 = vld [vmem:[%s3940_s15 + $0x50] sm:$0xff] }
 0x341   : > { %v1147_v8 = vsel %vm855_vm13, %v1142_v7, %v1144_v39  ;;  %v2636_v39 = vpack.c.bf16 %v1359_v35, %v1358_v34 }
 0x342   : > { %1151 = vst [vmem:[#allocation3 + $0x70] sm:$0xff] %v1147_v8  ;;  %v2630_v12 = vpack.c.bf16 %v1147_v8, %v1129_v3  ;;  %v2650_v3 = vpack.c.bf16 %v1349_v61, %v1348_v59  ;;  %v1368_v8 = vld [vmem:[%s3940_s15 + $0xe0] sm:$0xff] }
 0x343   : > { %2637 = vmatprep.subr.bf16.mxu0 %v2636_v39 }
 0x344   : > { %v1163_v13 = vpop.permute.xlu1 %1162  ;;  %v1167_v15 = vpop.permute.xlu0 %1166  ;;  %2631 = vmatpush1.bf16.msra.mxu1 %v2630_v12  ;;  %2639 = vmatpush3.bf16.msra.mxu0 %v2638_v43  ;;  %v1369_v12 = vld [vmem:[%s3940_s15 + $0xe8] sm:$0xff] }
 0x345   : > { %v1168_v10 = vsel %vm886_vm4, %v1163_v13, %v1165_v6  ;;  %v1169_v11 = vsel %vm886_vm4, %v1165_v6, %v1167_v15  ;;  %2641 = vmatprep.subr.bf16.mxu0 %v2640_v44  ;;  %v1351_v6 = vld [vmem:[%s3940_s15 + $0x58] sm:$0xff]  ;;  %v1352_v13 = vld [vmem:[%s3940_s15 + $0x60] sm:$0xff]  ;;  %v2656_v15 = vpack.c.bf16 %v1369_v12, %v1368_v8 }
 0x346   : > { %1172 = vst [vmem:[#allocation3 + $0x80] sm:$0xff] %v1168_v10  ;;  %1219 = vmatprep.subr.mxu1 %v1169_v11  ;;  %v2654_v7 = vpack.c.bf16 %v1351_v6, %v1350_v5 }
 0x348   : > { %1220 = vmatpush1.msra.mxu1 %v1168_v10  ;;  %2643 = vmatpush3.bf16.msra.mxu0 %v2642_v51  ;;  %v1353_v10 = vld [vmem:[%s3940_s15 + $0x68] sm:$0xff]  ;;  %v1531_v51 = vld [vmem:[%s3930_s5] sm:$0xff] }
 0x349   : > { %2434 = vmatmul.mubr.msk.f32.vlgmr.msra.gmra.mrb[2].mxu1 %vm1199_vm14, %v1174_v16  ;;  %2645 = vmatprep.subr.bf16.mxu0 %v2644_v52  ;;  %v2658_v11 = vpack.c.bf16 %v1353_v10, %v1352_v13  ;;  %v1543_v52 = vld [vmem:[%s3931_s6 + $0x8] sm:$0xff] }
 0x34a   : > { %2565 = vmatprep.mubr.msk.f32.mxu1 %vm1199_vm14, %v1531_v51 }
 0x34c   : > { %2647 = vmatpush3.bf16.msra.mxu0 %v2646_v33 }
 0x34d   : > { %2649 = vmatprep.subr.bf16.mxu0 %v2648_v57 }
 0x350   : > { %2651 = vmatpush3.bf16.msra.mxu0 %v2650_v3 }
 0x351   : > { %2653 = vmatprep.subr.bf16.mxu0 %v2652_v4 }
 0x354   : > { %2655 = vmatpush3.bf16.msra.mxu0 %v2654_v7 }
 0x355   : > { %v1197_v17 = vpop.permute.xlu0 %1196  ;;  %2657 = vmatprep.subr.bf16.mxu0 %v2656_v15 }
 0x358   : > { %2659 = vmatpush3.bf16.msra.mxu0 %v2658_v11 }
 0x41c   : > { %v1269_v36 = vpop.f32.mrb[2].mxu1 }
 0x41d   : > { %v1270_v18 = vadd.f32 %v1269_v36, %v1197_v17  ;;  %v1271_v26 = vpop.f32.mrb[3].mxu1  ;;  %v1371_v36 = vld [vmem:[%s3940_s15 + $0xf8] sm:$0xff] }
 0x41e   : > { %v1272_v25 = vadd.f32 %v1271_v26, %v1197_v17  ;;  %v1370_v17 = vld [vmem:[%s3940_s15 + $0xf0] sm:$0xff] }
 0x41f   : > { %v1274_v21 = vmax.f32 %v1270_v18, 0.0  ;;  %v1354_v18 = vld [vmem:[%s3940_s15 + $0x70] sm:$0xff]  ;;  %v2660_v26 = vpack.c.bf16 %v1371_v36, %v1370_v17 }
 0x420   : > { %v1275_v19 = vmax.f32 %v1272_v25, 0.0 }
 0x421   : > { %1280 = vrot.lane.b32.xlu1 %v1274_v21, %s3998_s29  ;;  %2661 = vmatprep.subr.bf16.mxu0 %v2660_v26 }
 0x425   : > { %1282 = vrot.lane.b32.xlu1 %v1275_v19, %s3998_s29 }
 0x493   : > { %v1281_v60 = vpop.permute.xlu1 %1280 }
 0x494   : > { %1288 = vst.msk [vmem:[#allocation2] sm:$0xff] %vm1005_vm12, %v1281_v60 }
 0x497   : > { %v1283_v14 = vpop.permute.xlu1 %1282 }
 0x498   : > { %v1284_v63 = vsel %vm624_vm7, %v1281_v60, %v1283_v14  ;;  %1290 = vst.msk [vmem:[#allocation2 + $0x10] sm:$0xff] %vm624_vm7, %v1283_v14 }
 0x499   : > { %1299 = vrot.lane.b32.xlu1 %v1284_v63, %s3995_s23 }
 0x49b   : > { %v1291_v9 = vld [vmem:[#allocation2] sm:$0xff] }
 0x49c   : > { %1297 = vrot.lane.b32.xlu0 %v1291_v9, %s3995_s23 }
 0x49f   : > { %v1293_v20 = vld [vmem:[#allocation2 + $0x10] sm:$0xff] }
 0x4a0   : > { %1301 = vrot.lane.b32.xlu0 %v1293_v20, %s3995_s23 }
 0x50b   : > { %v1300_v28 = vpop.permute.xlu1 %1299 }
 0x50e   : > { %v1298_v56 = vpop.permute.xlu0 %1297 }
 0x50f   : > { %v1303_v37 = vsel %vm797_vm2, %v1298_v56, %v1300_v28 }
 0x510   : > { %v3361_v58 = vmax.f32 %v1274_v21, %v1303_v37  ;;  %v1355_v21 = vld [vmem:[%s3940_s15 + $0x78] sm:$0xff] }
 0x512   : > { %v1302_v22 = vpop.permute.xlu0 %1301  ;;  %1311 = vrot.lane.b32.xlu1 %v3361_v58, %s3998_s29 }
 0x513   : > { %v1304_v23 = vsel %vm797_vm2, %v1300_v28, %v1302_v22  ;;  %vm1459_vm2 = vcmask 523264  }
 0x514   : > { %v3375_v49 = vmax.f32 %v1275_v19, %v1304_v23  ;;  %v2662_v19 = vpack.c.bf16 %v1355_v21, %v1354_v18 }
 0x516   : > { %1313 = vrot.lane.b32.xlu0 %v3375_v49, %s3998_s29  ;;  %2663 = vmatpush3.bf16.msra.mxu0 %v2662_v19  ;;  %s2961_s29 = smov 119  }
 0x584   : > { %v1312_v16 = vpop.permute.xlu1 %1311 }
 0x585   : > { %1319 = vst.msk [vmem:[#allocation2] sm:$0xff] %vm1005_vm12, %v1312_v16 }
 0x588   : > { %v1314_v25 = vpop.permute.xlu0 %1313 }
 0x589   : > { %1321 = vst.msk [vmem:[#allocation2 + $0x10] sm:$0xff] %vm624_vm7, %v1314_v25  ;;  %v1315_v60 = vsel %vm624_vm7, %v1312_v16, %v1314_v25  ;;  %vm1455_vm7 = vcmp.lt.s32.totalorder %v1452_v29, 7  ;;  %v1532_v16 = vld [vmem:[%s3930_s5 + $0x8] sm:$0xff] }
 0x58a   : > { %1320 = vst [vmem:[#allocation2 + $0x8] sm:$0xff] %v1315_v60  ;;  %v1456_v48 = vsel %vm1455_vm7, 1.0, %v2940_v1 }
 0x58c   : > { %v1322_v14 = vld [vmem:[#allocation2] sm:$0xff] }
 0x58d   : > { %1328 = vrot.lane.b32.xlu0 %v1322_v14, %s4005_s26  ;;  %1443 = vst.msk [vmem:[#allocation2] sm:$0xff] %vm1442_vm15, %v2940_v1  ;;  %v2963_v14 = vmov 0.0|0.0  }
 0x58e   : > { %1445 = vst.msk [vmem:[#allocation2] sm:$0xff] %vm1444_vm0, %v2940_v1 }
 0x590   : > { %v1324_v63 = vld [vmem:[#allocation2 + $0x10] sm:$0xff] }
 0x591   : > { %v2870_v9 = vpack.i.bf16 %v1324_v63, %v1315_v60 }
 0x593   : > { %2871 = vrot.lane.b32.xlu1 %v2870_v9, %s4005_s26  ;;  %s4008_s26 = smov 2  }
 0x594   : > { %1469 = vrot.lane.b32.xlu0 %v1456_v48, %s4008_s26 }
 0x598   : > { %1496 = vrot.lane.b32.xlu0 %v1456_v48, %s2957_s25 }
 0x59c   : > { %1522 = vrot.lane.b32.xlu0 %v1456_v48, %s4009_s0  ;;  %s4015_s0 = sld [smem:[#allocation22_spill]] }
 0x5ff   : > { %v1329_v37 = vpop.permute.xlu0 %1328 }
 0x605   : > { %v2872_v20 = vpop.permute.xlu1 %2871 }
 0x606   : > { %v2874_v56 = vunpack.i.h.bf16 %v2872_v20  ;;  %v2873_v28 = vunpack.i.l.bf16 %v2872_v20  ;;  %v3494_v35 = vpop.permute.xlu0 %1469 }
 0x608   : > { %v1335_v22 = vsel %vm855_vm13, %v2873_v28, %v2874_v56  ;;  %v1334_v23 = vsel %vm855_vm13, %v1329_v37, %v2873_v28  ;;  %vm1453_vm13 = vcmp.gt.s32.totalorder %v1452_v29, 0 }
 0x609   : > { %v1339_v24 = vmax.f32 %v3375_v49, %v1335_v22  ;;  %v1338_v27 = vmax.f32 %v3361_v58, %v1334_v23  ;;  %v3488_v2 = vsel %vm1453_vm13, 1.0, %v2940_v1 }
 0x60a   : > { %v3508_v31 = vpop.permute.xlu0 %1496 }
 0x60b   : > { %1436 = vmatprep.mubr.f32.mxu0 %v1339_v24 }
 0x60c   : > { %1437 = vmatmul.mubr.f32.vlgmr.msra.gmra.mrb[0].mxu0 %v1338_v27 }
 0x60d   : > { %2016 = vmatprep.mubr.f32.mxu0 %v2940_v1 }
 0x60e   : > { %v3517_v46 = vpop.permute.xlu0 %1522 }
 0x6df   : > { %v2480_v58 = vpop.f32.mrb[0].mxu0 }
 0x6e0   : > { %v2481_v49 = vpop.f32.mrb[1].mxu0 }
 0x6e1   : > { %v2482_v30 = vadd.f32 %v2481_v49, %v2480_v58 }
 0x6e3   : > { %1447 = vrot.lane.b32.xlu1 %v2482_v30, %s2958_s21 }
 0x6e7   : > { %1480 = vrot.lane.b32.xlu1 %v3488_v2, %s2959_s4  ;;  %s2447_s4 = sshll.u32 %s3119_s27, 4  ;;  %s4012_s27 = sld [smem:[#allocation20_spill]] }
 0x6eb   : > { %1506 = vrot.lane.b32.xlu1 %v3488_v2, %s4010_s18 }
 0x755   : > { %v1448_v34 = vpop.permute.xlu1 %1447 }
 0x756   : > { %1451 = vst.msk [vmem:[#allocation2] sm:$0xff] %vm1450_vm1, %v1448_v34 }
 0x759   : > { %v3497_v40 = vpop.permute.xlu1 %1480 }
 0x75d   : > { %v1457_v38 = vld [vmem:[#allocation2] sm:$0xff]  ;;  %v3512_v44 = vpop.permute.xlu1 %1506 }
 0x75e   : > { %v1458_v39 = vmul.f32 %v1457_v38, %v3488_v2  ;;  %1463 = vrot.lane.b32.xlu1 %v1457_v38, %s4000_s28  ;;  %1637 = vst.msk [vmem:[#allocation2] sm:$0xff] %vm1442_vm15, %v2940_v1  ;;  %v1472_v41 = vmul.f32 %v3494_v35, %v1457_v38  ;;  %v1483_v42 = vmul.f32 %v3497_v40, %v1457_v38 }
 0x75f   : > { %1639 = vst.msk [vmem:[#allocation2] sm:$0xff] %vm1444_vm0, %v2940_v1  ;;  %v1499_v43 = vmul.f32 %v3508_v31, %v1457_v38  ;;  %v1509_v45 = vmul.f32 %v3512_v44, %v1457_v38  ;;  %v1525_v47 = vmul.f32 %v3517_v46, %v1457_v38 }
 0x760   : > { %1460 = vst.msk [vmem:[#allocation3] sm:$0xff] %vm1459_vm2, %v1458_v39  ;;  %1474 = vrot.lane.b32.xlu0 %v1472_v41, %s4001_s22  ;;  %v1785_v41 = vld [vmem:[%s3933_s8] sm:$0xff] }
 0x762   : > { %1485 = vrot.lane.b32.xlu1 %v1483_v42, %s2960_s2 }
 0x764   : > { %1491 = vrot.lane.b32.xlu0 %v1457_v38, %s2961_s29 }
 0x766   : > { %1501 = vrot.lane.b32.xlu1 %v1499_v43, %s2962_s14 }
 0x767   : > { %v1533_v57 = vld [vmem:[#allocation3] sm:$0xff] }
 0x768   : > { %1511 = vrot.lane.b32.xlu0 %v1509_v45, %s4002_s24 }
 0x76a   : > { %1517 = vrot.lane.b32.xlu1 %v1457_v38, %s3999_s20  ;;  %v1764_v38 = vld [vmem:[%s3932_s7 + $0x8] sm:$0xff] }
 0x76c   : > { %1527 = vrot.lane.b32.xlu0 %v1525_v47, %s3995_s23 }
 0x76e   : > { %1546 = vperm.xlu1 %2868, %v1542_v50  }
 0x770   : > { %1551 = vperm.xlu0 %2869, %v1543_v52  }
 0x7d0   : > { %v1464_v53 = vpop.permute.xlu1 %1463 }
 0x7d1   : > { %1466 = vst.msk [vmem:[#allocation3 + $0x10] sm:$0xff] %vm1459_vm2, %v1464_v53 }
 0x7d2   : > { %v1475_v54 = vpop.permute.xlu0 %1474 }
 0x7d3   : > { %1477 = vst.msk [vmem:[#allocation3 + $0x20] sm:$0xff] %vm1459_vm2, %v1475_v54 }
 0x7d4   : > { %v1486_v32 = vpop.permute.xlu1 %1485 }
 0x7d5   : > { %1488 = vst.msk [vmem:[#allocation3 + $0x30] sm:$0xff] %vm1459_vm2, %v1486_v32 }
 0x7d6   : > { %v1492_v55 = vpop.permute.xlu0 %1491 }
 0x7d7   : > { %1494 = vst.msk [vmem:[#allocation3 + $0x40] sm:$0xff] %vm1459_vm2, %v1492_v55 }
 0x7d8   : > { %v1502_v33 = vpop.permute.xlu1 %1501  ;;  %v1534_v59 = vld [vmem:[#allocation3 + $0x10] sm:$0xff] }
 0x7d9   : > { %1504 = vst.msk [vmem:[#allocation3 + $0x50] sm:$0xff] %vm1459_vm2, %v1502_v33  ;;  %v2664_v61 = vpack.c.bf16 %v1534_v59, %v1533_v57 }
 0x7da   : > { %v1512_v62 = vpop.permute.xlu0 %1511  ;;  %v1535_v3 = vld [vmem:[#allocation3 + $0x20] sm:$0xff] }
 0x7db   : > { %2665 = vmatprep.subr.bf16.mxu1 %v2664_v61  ;;  %1514 = vst.msk [vmem:[#allocation3 + $0x60] sm:$0xff] %vm1459_vm2, %v1512_v62 }
 0x7dc   : > { %2667 = vmatpush3.bf16.msra.mxu1 %v2664_v61  ;;  %v1518_v0 = vpop.permute.xlu1 %1517  ;;  %v1536_v4 = vld [vmem:[#allocation3 + $0x30] sm:$0xff] }
 0x7dd   : > { %1520 = vst.msk [vmem:[#allocation3 + $0x70] sm:$0xff] %vm1459_vm2, %v1518_v0  ;;  %v2668_v5 = vpack.c.bf16 %v1536_v4, %v1535_v3 }
 0x7de   : > { %v1528_v6 = vpop.permute.xlu0 %1527  ;;  %v1537_v7 = vld [vmem:[#allocation3 + $0x40] sm:$0xff] }
 0x7df   : > { %2669 = vmatprep.subr.bf16.mxu1 %v2668_v5  ;;  %1530 = vst.msk [vmem:[#allocation3 + $0x80] sm:$0xff] %vm1459_vm2, %v1528_v6 }
 0x7e0   : > { %2671 = vmatpush3.bf16.msra.mxu1 %v2668_v5  ;;  %v1538_v8 = vld [vmem:[#allocation3 + $0x50] sm:$0xff] }
 0x7e1   : > { %v2672_v12 = vpack.c.bf16 %v1538_v8, %v1537_v7 }
 0x7e2   : > { %v1539_v13 = vld [vmem:[#allocation3 + $0x60] sm:$0xff] }
 0x7e3   : > { %2673 = vmatprep.subr.bf16.mxu1 %v2672_v12 }
 0x7e4   : > { %2675 = vmatpush3.bf16.msra.mxu1 %v2672_v12  ;;  %v1540_v15 = vld [vmem:[#allocation3 + $0x70] sm:$0xff] }
 0x7e5   : > { %v2676_v10 = vpack.c.bf16 %v1540_v15, %v1539_v13 }
 0x7e6   : > { %v1541_v11 = vld [vmem:[#allocation3 + $0x80] sm:$0xff] }
 0x7e7   : > { %2677 = vmatprep.subr.bf16.mxu1 %v2676_v10 }
 0x7e8   : > { %2679 = vmatpush3.bf16.msra.mxu1 %v2676_v10 }
 0x7e9   : > { %2563 = vmatprep.subr.mxu1 %v1541_v11 }
 0x7ec   : > { %2564 = vmatpush3.msra.mxu1 %v1541_v11 }
 0x7ed   : > { %2566 = vmatmul.mubr.msk.f32.vlgmr.msra.gmra.mrb[4].mxu1 %vm1199_vm14, %v1532_v16  ;;  %v1547_v18 = vpop.permute.xlu1 %1546  ;;  %2680 = vmatprep.subr.bf16.mxu1 %v2963_v14 }
 0x7ee   : > { %2437 = vmatprep.mubr.msk.f32.mxu1 %vm721_vm10, %v1764_v38 }
 0x7ef   : > { %v1552_v17 = vpop.permute.xlu0 %1551 }
 0x8c0   : > { %v2567_v36 = vpop.f32.mrb[4].mxu1 }
 0x8c1   : > { %v1632_v26 = vadd.f32 %v2567_v36, %v1552_v17  ;;  %v1626_v21 = vpop.f32.mrb[5].mxu1 }
 0x8c2   : > { %v1627_v25 = vadd.f32 %v1626_v21, %v1547_v18 }
 0x8c3   : > { %v1636_v19 = vmax.f32 %v1632_v26, 0.0 }
 0x8c4   : > { %v1635_v60 = vmax.f32 %v1627_v25, 0.0 }
 0x8c5   : > { %1645 = vrot.lane.b32.xlu0 %v1636_v19, %s2958_s21 }
 0x8c6   : > { %1643 = vrot.lane.b32.xlu1 %v1635_v60, %s2958_s21 }
 0x937   : > { %v1646_v63 = vpop.permute.xlu0 %1645 }
 0x938   : > { %1650 = vst.msk [vmem:[#allocation2 + $0x18] sm:$0xff] %vm1450_vm1, %v1646_v63  ;;  %v1644_v9 = vpop.permute.xlu1 %1643  ;;  %v1763_v63 = vld [vmem:[%s3932_s7] sm:$0xff] }
 0x939   : > { %1649 = vst.msk [vmem:[#allocation2] sm:$0xff] %vm1450_vm1, %v1644_v9  ;;  %v1766_v9 = vld [vmem:[%s3932_s7 + $0x18] sm:$0xff] }
 0x93f   : > { %v1652_v20 = vld [vmem:[#allocation2 + $0x18] sm:$0xff] }
 0x940   : > { %v1654_v56 = vmul.f32 %v1652_v20, %v3488_v2  ;;  %v1651_v28 = vld [vmem:[#allocation2] sm:$0xff]  ;;  %1663 = vrot.lane.b32.xlu0 %v1652_v20, %s4000_s28  ;;  %1883 = vst.msk [vmem:[#allocation2 + $0x18] sm:$0xff] %vm1442_vm15, %v2940_v1  ;;  %v1672_v22 = vmul.f32 %v1652_v20, %v3494_v35  ;;  %v1686_v24 = vmul.f32 %v1652_v20, %v3497_v40 }
 0x941   : > { %v1653_v37 = vmul.f32 %v1651_v28, %v3488_v2  ;;  %1661 = vrot.lane.b32.xlu1 %v1651_v28, %s4000_s28  ;;  %1882 = vst.msk [vmem:[#allocation2] sm:$0xff] %vm1442_vm15, %v2940_v1  ;;  %v1671_v23 = vmul.f32 %v1651_v28, %v3494_v35  ;;  %v1685_v27 = vmul.f32 %v1651_v28, %v3497_v40  ;;  %v1786_v40 = vld [vmem:[%s3933_s8 + $0x8] sm:$0xff] }
 0x942   : > { %1885 = vst.msk [vmem:[#allocation2 + $0x18] sm:$0xff] %vm1444_vm0, %v2940_v1  ;;  %1884 = vst.msk [vmem:[#allocation2] sm:$0xff] %vm1444_vm0, %v2940_v1  ;;  %v1712_v49 = vmul.f32 %v1652_v20, %v3508_v31  ;;  %v1711_v30 = vmul.f32 %v1651_v28, %v3508_v31  ;;  %v1726_v2 = vmul.f32 %v1652_v20, %v3512_v44 }
 0x943   : > { %1656 = vst.msk [vmem:[#allocation3 + $0x10] sm:$0xff] %vm1459_vm2, %v1654_v56  ;;  %1655 = vst.msk [vmem:[#allocation3] sm:$0xff] %vm1459_vm2, %v1653_v37  ;;  %v1725_v34 = vmul.f32 %v1651_v28, %v3512_v44  ;;  %v1752_v35 = vmul.f32 %v1652_v20, %v3517_v46  ;;  %v1751_v39 = vmul.f32 %v1651_v28, %v3517_v46 }
 0x944   : > { %1677 = vrot.lane.b32.xlu0 %v1672_v22, %s4001_s22 }
 0x945   : > { %1675 = vrot.lane.b32.xlu1 %v1671_v23, %s4001_s22  ;;  %s612_s22 = scalar_lea.vmem %s3944_s19, %s2447_s4  ;;  %s4016_s4 = smov %s4015_s0 }
 0x948   : > { %1691 = vrot.lane.b32.xlu0 %v1686_v24, %s2960_s2 }
 0x949   : > { %1689 = vrot.lane.b32.xlu1 %v1685_v27, %s2960_s2 }
 0x94a   : > { %v1768_v29 = vld [vmem:[#allocation3 + $0x10] sm:$0xff]  ;;  %v1767_v48 = vld [vmem:[#allocation3] sm:$0xff] }
 0x94b   : > { %v2681_v58 = vpack.c.bf16 %v1768_v29, %v1767_v48 }
 0x94c   : > { %1703 = vrot.lane.b32.xlu0 %v1652_v20, %s2961_s29 }
 0x94d   : > { %1701 = vrot.lane.b32.xlu1 %v1651_v28, %s2961_s29  ;;  %2682 = vmatpush1.bf16.msra.mxu1 %v2681_v58 }
 0x94e   : > { %2683 = vmatprep.subr.bf16.mxu1 %v2963_v14 }
 0x950   : > { %1717 = vrot.lane.b32.xlu0 %v1712_v49, %s2962_s14 }
 0x951   : > { %1715 = vrot.lane.b32.xlu1 %v1711_v30, %s2962_s14 }
 0x954   : > { %1731 = vrot.lane.b32.xlu0 %v1726_v2, %s4002_s24 }
 0x955   : > { %1729 = vrot.lane.b32.xlu1 %v1725_v34, %s4002_s24  ;;  %s594_s24 = sand.u32 1, %s2930_s30  }
 0x956   : > { %s595_s1 = scalar_lea.vmem [#allocation4], %s594_s24  ;;  %s2323_s18 = scalar_lea.sflag [#allocation5], %s594_s24 }
 0x958   : > { %1743 = vrot.lane.b32.xlu0 %v1652_v20, %s3999_s20  ;;  %v1765_v20 = vld [vmem:[%s3932_s7 + $0x10] sm:$0xff] }
 0x959   : > { %1741 = vrot.lane.b32.xlu1 %v1651_v28, %s3999_s20 }
 0x95c   : > { %1757 = vrot.lane.b32.xlu0 %v1752_v35, %s3995_s23 }
 0x95d   : > { %1755 = vrot.lane.b32.xlu1 %v1751_v39, %s3995_s23  ;;  %v1931_v39 = vld [vmem:[%s3941_s16 + $0x8] sm:$0xff]  ;;  %s4014_s23 = sld [smem:[#allocation21_spill]] }
 0x960   : > { %1794 = vperm.xlu0 %2869, %v1786_v40   ;;  %v1933_v40 = vld [vmem:[%s3941_s16 + $0x18] sm:$0xff] }
 0x961   : > { %1789 = vperm.xlu1 %2868, %v1785_v41   ;;  %v1930_v41 = vld [vmem:[%s3941_s16] sm:$0xff] }
 0x9b2   : > { %v1664_v42 = vpop.permute.xlu0 %1663 }
 0x9b3   : > { %1668 = vst.msk [vmem:[#allocation3 + $0x30] sm:$0xff] %vm1459_vm2, %v1664_v42  ;;  %v1662_v31 = vpop.permute.xlu1 %1661  ;;  %v2707_v42 = vpack.c.bf16 %v1933_v40, %v1931_v39  ;;  %v2060_v39 = vld [vmem:[%s3934_s9 + $0x48] sm:$0xff] }
 0x9b4   : > { %1667 = vst.msk [vmem:[#allocation3 + $0x20] sm:$0xff] %vm1459_vm2, %v1662_v31  ;;  %v1932_v31 = vld [vmem:[%s3941_s16 + $0x10] sm:$0xff] }
 0x9b5   : > { %2708 = vmatprep.subr.bf16.mxu0 %v2707_v42  ;;  %v2078_v42 = vld [vmem:[%s3934_s9 + $0xd8] sm:$0xff] }
 0x9b6   : > { %v1678_v43 = vpop.permute.xlu0 %1677 }
 0x9b7   : > { %1682 = vst.msk [vmem:[#allocation3 + $0x50] sm:$0xff] %vm1459_vm2, %v1678_v43  ;;  %v1676_v44 = vpop.permute.xlu1 %1675  ;;  %v1935_v43 = vld [vmem:[%s3941_s16 + $0x28] sm:$0xff] }
 0x9b8   : > { %1681 = vst.msk [vmem:[#allocation3 + $0x40] sm:$0xff] %vm1459_vm2, %v1676_v44  ;;  %v1937_v44 = vld [vmem:[%s3941_s16 + $0x38] sm:$0xff] }
 0x9ba   : > { %v1692_v45 = vpop.permute.xlu0 %1691  ;;  %v1770_v46 = vld [vmem:[#allocation3 + $0x30] sm:$0xff] }
 0x9bb   : > { %1696 = vst.msk [vmem:[#allocation3 + $0x70] sm:$0xff] %vm1459_vm2, %v1692_v45  ;;  %v1690_v47 = vpop.permute.xlu1 %1689  ;;  %v1769_v50 = vld [vmem:[#allocation3 + $0x20] sm:$0xff] }
 0x9bc   : > { %1695 = vst.msk [vmem:[#allocation3 + $0x60] sm:$0xff] %vm1459_vm2, %v1690_v47  ;;  %v2684_v51 = vpack.c.bf16 %v1770_v46, %v1769_v50  ;;  %v2709_v46 = vpack.c.bf16 %v1932_v31, %v1930_v41  ;;  %v2711_v47 = vpack.c.bf16 %v1937_v44, %v1935_v43  ;;  %v1934_v50 = vld [vmem:[%s3941_s16 + $0x20] sm:$0xff]  ;;  %v2077_v41 = vld [vmem:[%s3934_s9 + $0xd0] sm:$0xff]  ;;  %v2062_v44 = vld [vmem:[%s3934_s9 + $0x58] sm:$0xff] }
 0x9bd   : > { %v2061_v31 = vld [vmem:[%s3934_s9 + $0x50] sm:$0xff]  ;;  %v2743_v43 = vpack.c.bf16 %v2078_v42, %v2077_v41  ;;  %v2243_v41 = vld [vmem:[%s3938_s13 + $0x28] sm:$0xff] }
 0x9be   : > { %v1704_v52 = vpop.permute.xlu0 %1703  ;;  %2685 = vmatpush1.bf16.msra.mxu1 %v2684_v51  ;;  %v1772_v53 = vld [vmem:[#allocation3 + $0x50] sm:$0xff]  ;;  %v1936_v51 = vld [vmem:[%s3941_s16 + $0x30] sm:$0xff]  ;;  %2710 = vmatpush1.bf16.msra.mxu0 %v2709_v46  ;;  %v2080_v46 = vld [vmem:[%s3934_s9 + $0xe8] sm:$0xff] }
 0x9bf   : > { %1708 = vst.msk [vmem:[#allocation3 + $0x90] sm:$0xff] %vm1459_vm2, %v1704_v52  ;;  %v1702_v54 = vpop.permute.xlu1 %1701  ;;  %2686 = vmatprep.subr.bf16.mxu1 %v2963_v14  ;;  %v1771_v32 = vld [vmem:[#allocation3 + $0x40] sm:$0xff]  ;;  %v1939_v52 = vld [vmem:[%s3941_s16 + $0x48] sm:$0xff]  ;;  %2712 = vmatprep.subr.bf16.mxu0 %v2711_v47  ;;  %v2745_v47 = vpack.c.bf16 %v2062_v44, %v2061_v31 }
 0x9c0   : > { %1707 = vst.msk [vmem:[#allocation3 + $0x80] sm:$0xff] %vm1459_vm2, %v1702_v54  ;;  %v2687_v55 = vpack.c.bf16 %v1772_v53, %v1771_v32  ;;  %v1941_v54 = vld [vmem:[%s3941_s16 + $0x58] sm:$0xff]  ;;  %v2713_v32 = vpack.c.bf16 %v1936_v51, %v1934_v50  ;;  %v2063_v51 = vld [vmem:[%s3934_s9 + $0x60] sm:$0xff] }
 0x9c2   : > { %v1718_v33 = vpop.permute.xlu0 %1717  ;;  %2688 = vmatpush1.bf16.msra.mxu1 %v2687_v55  ;;  %v1774_v57 = vld [vmem:[#allocation3 + $0x70] sm:$0xff]  ;;  %v2715_v55 = vpack.c.bf16 %v1941_v54, %v1939_v52  ;;  %2714 = vmatpush1.bf16.msra.mxu0 %v2713_v32  ;;  %v2064_v52 = vld [vmem:[%s3934_s9 + $0x68] sm:$0xff]  ;;  %v2082_v54 = vld [vmem:[%s3934_s9 + $0xf8] sm:$0xff] }
 0x9c3   : > { %1722 = vst.msk [vmem:[#allocation3 + $0xb0] sm:$0xff] %vm1459_vm2, %v1718_v33  ;;  %v1716_v59 = vpop.permute.xlu1 %1715  ;;  %2689 = vmatprep.subr.bf16.mxu1 %v2963_v14  ;;  %v1773_v61 = vld [vmem:[#allocation3 + $0x60] sm:$0xff]  ;;  %v1938_v33 = vld [vmem:[%s3941_s16 + $0x40] sm:$0xff]  ;;  %v2749_v32 = vpack.c.bf16 %v2064_v52, %v2063_v51 }
 0x9c4   : > { %1721 = vst.msk [vmem:[#allocation3 + $0xa0] sm:$0xff] %vm1459_vm2, %v1716_v59  ;;  %v2690_v62 = vpack.c.bf16 %v1774_v57, %v1773_v61  ;;  %v1940_v57 = vld [vmem:[%s3941_s16 + $0x50] sm:$0xff]  ;;  %v1943_v59 = vld [vmem:[%s3941_s16 + $0x68] sm:$0xff]  ;;  %v1945_v61 = vld [vmem:[%s3941_s16 + $0x78] sm:$0xff]  ;;  %2716 = vmatprep.subr.bf16.mxu0 %v2715_v55 }
 0x9c5   : > { %v2155_v55 = vld [vmem:[%s3936_s11] sm:$0xff] }
 0x9c6   : > { %v1732_v0 = vpop.permute.xlu0 %1731  ;;  %2691 = vmatpush1.bf16.msra.mxu1 %v2690_v62  ;;  %v1776_v3 = vld [vmem:[#allocation3 + $0x90] sm:$0xff]  ;;  %v2717_v62 = vpack.c.bf16 %v1940_v57, %v1938_v33  ;;  %v2156_v33 = vld [vmem:[%s3936_s11 + $0x8] sm:$0xff]  ;;  %v2157_v57 = vld [vmem:[%s3936_s11 + $0x10] sm:$0xff] }
 0x9c7   : > { %1736 = vst.msk [vmem:[#allocation3 + $0xd0] sm:$0xff] %vm1459_vm2, %v1732_v0  ;;  %v1730_v4 = vpop.permute.xlu1 %1729  ;;  %2692 = vmatprep.subr.bf16.mxu1 %v2963_v14  ;;  %v1775_v5 = vld [vmem:[#allocation3 + $0x80] sm:$0xff]  ;;  %v2719_v0 = vpack.c.bf16 %v1945_v61, %v1943_v59  ;;  %v2163_v52 = vld [vmem:[%s4012_s27] sm:$0x1] }
 0x9c8   : > { %1735 = vst.msk [vmem:[#allocation3 + $0xc0] sm:$0xff] %vm1459_vm2, %v1730_v4  ;;  %v2693_v6 = vpack.c.bf16 %v1776_v3, %v1775_v5  ;;  %v1942_v3 = vld [vmem:[%s3941_s16 + $0x60] sm:$0xff]  ;;  %v1944_v4 = vld [vmem:[%s3941_s16 + $0x70] sm:$0xff]  ;;  %2718 = vmatpush1.bf16.msra.mxu0 %v2717_v62  ;;  %v2066_v62 = vld [vmem:[%s3934_s9 + $0x78] sm:$0xff] }
 0x9c9   : > { %v2721_v5 = vpack.c.bf16 %v1944_v4, %v1942_v3  ;;  %2720 = vmatprep.subr.bf16.mxu0 %v2719_v0  ;;  %v2065_v61 = vld [vmem:[%s3934_s9 + $0x70] sm:$0xff]  ;;  %v2756_v0 = vpack.c.bf16 %v2156_v33, %v2155_v55  ;;  %v2158_v3 = vld [vmem:[%s3936_s11 + $0x18] sm:$0xff]  ;;  %v2246_v33 = vld [vmem:[%s4014_s23] sm:$0x1] }
 0x9ca   : > { %v1744_v7 = vpop.permute.xlu0 %1743  ;;  %2694 = vmatpush1.bf16.msra.mxu1 %v2693_v6  ;;  %v1778_v8 = vld [vmem:[#allocation3 + $0xb0] sm:$0xff]  ;;  %v2759_v4 = vpack.c.bf16 %v2158_v3, %v2157_v57 }
 0x9cb   : > { %1748 = vst.msk [vmem:[#allocation3 + $0xf0] sm:$0xff] %vm1459_vm2, %v1744_v7  ;;  %v1742_v12 = vpop.permute.xlu1 %1741  ;;  %2695 = vmatprep.subr.bf16.mxu1 %v2963_v14  ;;  %v1777_v13 = vld [vmem:[#allocation3 + $0xa0] sm:$0xff]  ;;  %v2067_v7 = vld [vmem:[%s3934_s9 + $0x80] sm:$0xff] }
 0x9cc   : > { %1747 = vst.msk [vmem:[#allocation3 + $0xe0] sm:$0xff] %vm1459_vm2, %v1742_v12  ;;  %v2696_v15 = vpack.c.bf16 %v1778_v8, %v1777_v13  ;;  %2722 = vmatpush1.bf16.msra.mxu0 %v2721_v5  ;;  %v2068_v8 = vld [vmem:[%s3934_s9 + $0x88] sm:$0xff]  ;;  %v2753_v5 = vpack.c.bf16 %v2066_v62, %v2065_v61 }
 0x9cd   : > { %v2723_v12 = vpack.c.bf16 %v2068_v8, %v2067_v7  ;;  %v2029_v8 = vld [vmem:[%s3942_s17] sm:$0xff] }
 0x9ce   : > { %v1758_v10 = vpop.permute.xlu0 %1757  ;;  %2697 = vmatpush1.bf16.msra.mxu1 %v2696_v15  ;;  %v1780_v11 = vld [vmem:[#allocation3 + $0xd0] sm:$0xff] }
 0x9cf   : > { %1762 = vst.msk [vmem:[#allocation3 + $0x110] sm:$0xff] %vm1459_vm2, %v1758_v10  ;;  %v1756_v16 = vpop.permute.xlu1 %1755  ;;  %2698 = vmatprep.subr.bf16.mxu1 %v2963_v14  ;;  %v1779_v17 = vld [vmem:[#allocation3 + $0xc0] sm:$0xff]  ;;  %2724 = vmatprep.subr.bf16.mxu0 %v2723_v12 }
 0x9d0   : > { %1761 = vst.msk [vmem:[#allocation3 + $0x100] sm:$0xff] %vm1459_vm2, %v1756_v16  ;;  %v2699_v36 = vpack.c.bf16 %v1780_v11, %v1779_v17  ;;  %v2051_v11 = vld [vmem:[%s3934_s9] sm:$0xff]  ;;  %v2052_v16 = vld [vmem:[%s3934_s9 + $0x8] sm:$0xff]  ;;  %v2069_v17 = vld [vmem:[%s3934_s9 + $0x90] sm:$0xff] }
 0x9d1   : > { %v2031_v12 = vld [vmem:[%s3942_s17 + $0x10] sm:$0xff] }
 0x9d2   : > { %2700 = vmatpush1.bf16.msra.mxu1 %v2699_v36  ;;  %v1782_v18 = vld [vmem:[#allocation3 + $0xf0] sm:$0xff]  ;;  %v2070_v36 = vld [vmem:[%s3934_s9 + $0x98] sm:$0xff] }
 0x9d3   : > { %2701 = vmatprep.subr.bf16.mxu1 %v2963_v14  ;;  %v1781_v26 = vld [vmem:[#allocation3 + $0xe0] sm:$0xff] }
 0x9d4   : > { %v2702_v21 = vpack.c.bf16 %v1782_v18, %v1781_v26  ;;  %v2725_v26 = vpack.c.bf16 %v2052_v16, %v2051_v11 }
 0x9d6   : > { %2703 = vmatpush1.bf16.msra.mxu1 %v2702_v21  ;;  %v1784_v25 = vld [vmem:[#allocation3 + $0x110] sm:$0xff] }
 0x9d7   : > { %2704 = vmatprep.subr.bf16.mxu1 %v2963_v14  ;;  %v1783_v19 = vld [vmem:[#allocation3 + $0x100] sm:$0xff] }
 0x9d8   : > { %v2705_v60 = vpack.c.bf16 %v1784_v25, %v1783_v19  ;;  %v2727_v25 = vpack.c.bf16 %v2070_v36, %v2069_v17  ;;  %v2053_v19 = vld [vmem:[%s3934_s9 + $0x10] sm:$0xff] }
 0x9da   : > { %2706 = vmatpush1.bf16.msra.mxu1 %v2705_v60  ;;  %v2054_v60 = vld [vmem:[%s3934_s9 + $0x18] sm:$0xff] }
 0x9db   : > { %2755 = vmatprep.subr.bf16.mxu1 %v2963_v14 }
 0x9dd   : > { %1868 = vmatmul.mubr.f32.vlgmr.msra.gmra.mrb[6].mxu1 %v1763_v63  ;;  %v2071_v63 = vld [vmem:[%s3934_s9 + $0xa0] sm:$0xff] }
 0x9de   : > { %2438 = vmatprep.mubr.msk.f32.mxu1 %vm721_vm10, %v1766_v9  ;;  %v2072_v9 = vld [vmem:[%s3934_s9 + $0xa8] sm:$0xff]  ;;  %2757 = vmatpush3.bf16.msra.mxu1 %v2756_v0  ;;  %vm2964_vm10 = vmmov 0  }
 0x9df   : > { %v1795_v24 = vpop.permute.xlu0 %1794  ;;  %2758 = vmatprep.subr.bf16.mxu1 %v2963_v14 }
 0x9e0   : > { %v1790_v56 = vpop.permute.xlu1 %1789 }
 0x9e1   : > { %1873 = vmatmul.mubr.f32.gmra.mrb[8].mxu1 %v1765_v20 }
 0x9e2   : > { %2760 = vmatpush3.bf16.msra.mxu1 %v2759_v4  ;;  %2584 = vmatprep.mubr.msk.f32.mxu1 %vm2964_vm10, %v2940_v1 }
 0x9e3   : > { %2761 = vmatprep.subr.bf16.mxu1 %v2963_v14 }
 0xab0   : > { %v1869_v28 = vpop.f32.mrb[6].mxu1 }
 0xab1   : > { %v1870_v37 = vadd.f32 %v1869_v28, %v1790_v56  ;;  %v1871_v22 = vpop.f32.mrb[7].mxu1  ;;  %v2729_v56 = vpack.c.bf16 %v2054_v60, %v2053_v19 }
 0xab2   : > { %v2055_v22 = vld [vmem:[%s3934_s9 + $0x20] sm:$0xff] }
 0xab3   : > { %v1878_v23 = vmax.f32 %v1870_v37, 0.0  ;;  %v2731_v37 = vpack.c.bf16 %v2072_v9, %v2071_v63 }
 0xab4   : > { %v1874_v27 = vpop.f32.mrb[8].mxu1 }
 0xab5   : > { %1880 = vst.msk [vmem:[%s612_s22] sm:$0xff] %vm1459_vm2, %v1878_v23  ;;  %v1875_v29 = vadd.f32 %v1874_v27, %v1795_v24  ;;  %v1876_v48 = vpop.f32.mrb[9].mxu1  ;;  %1888 = vrot.lane.b32.xlu1 %v1878_v23, %s2958_s21  ;;  %v2073_v27 = vld [vmem:[%s3934_s9 + $0xb0] sm:$0xff] }
 0xab7   : > { %v1879_v58 = vmax.f32 %v1875_v29, 0.0  ;;  %v2074_v29 = vld [vmem:[%s3934_s9 + $0xb8] sm:$0xff] }
 0xab8   : > { %v2735_v48 = vpack.c.bf16 %v2074_v29, %v2073_v27  ;;  %v2159_v27 = vld [vmem:[%s3936_s11 + $0x20] sm:$0xff]  ;;  %v2160_v29 = vld [vmem:[%s3936_s11 + $0x28] sm:$0xff] }
 0xab9   : > { %1881 = vst.msk [vmem:[%s612_s22 + $0x8] sm:$0xff] %vm1459_vm2, %v1879_v58  ;;  %1890 = vrot.lane.b32.xlu0 %v1879_v58, %s2958_s21 }
 0xb27   : > { %v1889_v49 = vpop.permute.xlu1 %1888 }
 0xb28   : > { %1894 = vst.msk [vmem:[#allocation2] sm:$0xff] %vm1450_vm1, %v1889_v49  ;;  %v2058_v49 = vld [vmem:[%s3934_s9 + $0x38] sm:$0xff] }
 0xb2b   : > { %v1891_v30 = vpop.permute.xlu0 %1890 }
 0xb2c   : > { %1895 = vst.msk [vmem:[#allocation2 + $0x18] sm:$0xff] %vm1450_vm1, %v1891_v30 }
 0xb2f   : > { %v1896_v2 = vld [vmem:[#allocation2] sm:$0xff] }
 0xb30   : > { %1900 = vrot.lane.b32.xlu1 %v1896_v2, %s2962_s14  ;;  %v2075_v2 = vld [vmem:[%s3934_s9 + $0xc0] sm:$0xff] }
 0xb33   : > { %v1897_v34 = vld [vmem:[#allocation2 + $0x18] sm:$0xff] }
 0xb34   : > { %1902 = vrot.lane.b32.xlu0 %v1897_v34, %s2962_s14  ;;  %v2076_v34 = vld [vmem:[%s3934_s9 + $0xc8] sm:$0xff]  ;;  %s2340_s14 = sshll.u32 %s595_s1, 4  ;;  %s3885_s14 = int_to_ptr.vmem [resolvable:$true] %s2340_s14 }
 0xb35   : > { %s2876_s28 = scalar_lea.vmem %s3885_s14, 16 }
 0xb36   : > { %p2877_p11 = scmp.ne.s32.totalorder %s3885_s14, %s2876_s28 }
 0xb38   : > { %p2878_p12 = pnand %p2877_p11, %p3104_p5 }
 0xb3a   : > { %p2879_p13 = pneg %p2878_p12 }
 0xba2   : > { %v1901_v35 = vpop.permute.xlu1 %1900 }
 0xba3   : > { %v1906_v38 = vmax.f32 %v1878_v23, %v1901_v35  ;;  %v2056_v23 = vld [vmem:[%s3934_s9 + $0x28] sm:$0xff]  ;;  %v2739_v35 = vpack.c.bf16 %v2076_v34, %v2075_v2  ;;  %v2240_v34 = vld [vmem:[%s3938_s13 + $0x10] sm:$0xff] }
 0xba4   : > { %v2733_v24 = vpack.c.bf16 %v2056_v23, %v2055_v22  ;;  %v2239_v2 = vld [vmem:[%s3938_s13 + $0x8] sm:$0xff] }
 0xba5   : > { %1910 = vrot.lane.b32.xlu1 %v1906_v38, %s2958_s21 }
 0xba6   : > { %v1903_v45 = vpop.permute.xlu0 %1902 }
 0xba7   : > { %v1907_v53 = vmax.f32 %v1879_v58, %v1903_v45  ;;  %v2057_v58 = vld [vmem:[%s3934_s9 + $0x30] sm:$0xff]  ;;  %v2079_v45 = vld [vmem:[%s3934_s9 + $0xe0] sm:$0xff] }
 0xba8   : > { %v2737_v30 = vpack.c.bf16 %v2058_v49, %v2057_v58  ;;  %v2747_v50 = vpack.c.bf16 %v2080_v46, %v2079_v45  ;;  %v2762_v58 = vpack.c.bf16 %v2160_v29, %v2159_v27  ;;  %v2162_v49 = vld [vmem:[%s3936_s11 + $0x38] sm:$0xff] }
 0xba9   : > { %1912 = vrot.lane.b32.xlu0 %v1907_v53, %s2958_s21 }
 0xbaa   : > { %2763 = vmatpush3.bf16.msra.mxu1 %v2762_v58 }
 0xbab   : > { %2764 = vmatprep.subr.bf16.mxu1 %v2963_v14 }
 0xc17   : > { %v1911_v6 = vpop.permute.xlu1 %1910 }
 0xc18   : > { %1916 = vst.msk [vmem:[#allocation2] sm:$0xff] %vm1450_vm1, %v1911_v6 }
 0xc1b   : > { %v1913_v13 = vpop.permute.xlu0 %1912 }
 0xc1c   : > { %1917 = vst.msk [vmem:[#allocation2 + $0x18] sm:$0xff] %vm1450_vm1, %v1913_v13  ;;  %v2030_v13 = vld [vmem:[%s3942_s17 + $0x8] sm:$0xff] }
 0xc1f   : > { %v1918_v15 = vld [vmem:[#allocation2] sm:$0xff] }
 0xc20   : > { %1922 = vrot.lane.b32.xlu1 %v1918_v15, %s3999_s20  ;;  %v2032_v15 = vld [vmem:[%s3942_s17 + $0x18] sm:$0xff] }
 0xc23   : > { %v1919_v10 = vld [vmem:[#allocation2 + $0x18] sm:$0xff] }
 0xc24   : > { %1924 = vrot.lane.b32.xlu0 %v1919_v10, %s3999_s20  ;;  %s4011_s20 = sld [smem:[#allocation10_spill]] }
 0xc2a   : > { %s2443_s12 = sshll.u32 %s4011_s20, 4  ;;  %s2965_s20 = smov [#allocation4]  }
 0xc2b   : > { %s3883_s21 = scalar_lea.hbm %s4015_s0, %s2443_s12  ;;  %s2880_s22 = sshll.u32 %s2965_s20, 4  ;;  %s2881_s22 = int_to_ptr.vmem [resolvable:$false] %s2880_s22 }
 0xc2c   : > { %s2882_s27 = scalar_lea.vmem %s2881_s22, 32  ;;  %p2883_p0 = scmp.lt.s32.totalorder %s3885_s14, %s2881_s22 }
 0xc2d   : > { %p2884_p1 = scmp.lt.s32.totalorder %s2882_s27, %s2876_s28 }
 0xc2f   : > { %p2885_p2 = por %p2884_p1, %p2883_p0 }
 0xc31   : > { %p2886_p3 = pnand %p2885_p2, %p2879_p13 }
 0xc92   : > { %v1923_v18 = vpop.permute.xlu1 %1922 }
 0xc93   : > { %v1928_v21 = vmax.f32 %v1906_v38, %v1923_v18  ;;  %v2059_v38 = vld [vmem:[%s3934_s9 + $0x40] sm:$0xff] }
 0xc94   : > { %v2741_v40 = vpack.c.bf16 %v2060_v39, %v2059_v38  ;;  %v2241_v39 = vld [vmem:[%s3938_s13 + $0x18] sm:$0xff] }
 0xc95   : > { %2439 = vmatmul.mubr.msk.f32.vlgmr.msra.gmra.mrb[2].mxu0 %vm1459_vm2, %v1928_v21 }
 0xc96   : > { %v1925_v20 = vpop.permute.xlu0 %1924  ;;  %2022 = vmatprep.mubr.f32.mxu0 %v2940_v1  ;;  %2726 = vmatpush3.bf16.msra.mxu0 %v2725_v26 }
 0xc97   : > { %v1929_v28 = vmax.f32 %v1907_v53, %v1925_v20  ;;  %2728 = vmatprep.subr.bf16.mxu0 %v2727_v25  ;;  %v2081_v53 = vld [vmem:[%s3934_s9 + $0xf0] sm:$0xff] }
 0xc98   : > { %v2751_v59 = vpack.c.bf16 %v2082_v54, %v2081_v53 }
 0xc99   : > { %2440 = vmatmul.mubr.msk.f32.gmra.mrb[4].mxu0 %vm1459_vm2, %v1929_v28 }
 0xc9a   : > { %2730 = vmatpush3.bf16.msra.mxu0 %v2729_v56 }
 0xc9b   : > { %2732 = vmatprep.subr.bf16.mxu0 %v2731_v37 }
 0xc9e   : > { %2734 = vmatpush3.bf16.msra.mxu0 %v2733_v24 }
 0xc9f   : > { %2736 = vmatprep.subr.bf16.mxu0 %v2735_v48  ;;  %v2161_v48 = vld [vmem:[%s3936_s11 + $0x30] sm:$0xff] }
 0xca2   : > { %2738 = vmatpush3.bf16.msra.mxu0 %v2737_v30  ;;  %v2238_v30 = vld [vmem:[%s3938_s13] sm:$0xff] }
 0xca3   : > { %2740 = vmatprep.subr.bf16.mxu0 %v2739_v35  ;;  %v2765_v35 = vpack.c.bf16 %v2162_v49, %v2161_v48  ;;  %v2768_v38 = vpack.c.bf16 %v2239_v2, %v2238_v30 }
 0xca5   : > { %2766 = vmatpush3.bf16.msra.mxu1 %v2765_v35 }
 0xca6   : > { %2742 = vmatpush3.bf16.msra.mxu0 %v2741_v40  ;;  %v2242_v40 = vld [vmem:[%s3938_s13 + $0x20] sm:$0xff] }
 0xca7   : > { %2744 = vmatprep.subr.bf16.mxu0 %v2743_v43  ;;  %v2774_v42 = vpack.c.bf16 %v2243_v41, %v2242_v40  ;;  %v2083_v43 = vld [vmem:[%s3935_s10] sm:$0x1] }
 0xcaa   : > { %2746 = vmatpush3.bf16.msra.mxu0 %v2745_v47 }
 0xcab   : > { %2748 = vmatprep.subr.bf16.mxu0 %v2747_v50  ;;  %v2244_v50 = vld [vmem:[%s3938_s13 + $0x30] sm:$0xff] }
 0xcae   : > { %2750 = vmatpush3.bf16.msra.mxu0 %v2749_v32 }
 0xcaf   : > { %2752 = vmatprep.subr.bf16.mxu0 %v2751_v59 }
 0xcb2   : > { %2754 = vmatpush3.bf16.msra.mxu0 %v2753_v5 }
 0xcb3   : > { %2767 = vmatprep.subr.bf16.mxu0 %v2963_v14 }
 0xd68   : > { %v2018_v6 = vpop.f32.mrb[2].mxu0 }
 0xd69   : > { %v2020_v7 = vpop.f32.mrb[3].mxu0  ;;  %v2033_v11 = vmul.f32 %v2029_v8, %v2018_v6 }
 0xd6a   : > { %v2034_v36 = vmul.f32 %v2030_v13, %v2020_v7 }
 0xd6c   : > { %v2024_v10 = vpop.f32.mrb[4].mxu0 }
 0xd6d   : > { %v2035_v16 = vmul.f32 %v2031_v12, %v2024_v10  ;;  %v2026_v17 = vpop.f32.mrb[5].mxu0 }
 0xd6e   : > { %v2036_v18 = vmul.f32 %v2032_v15, %v2026_v17 }
 0xd6f   : > { %v2037_v26 = vadd.f32 %v2035_v16, %v2033_v11 }
 0xd70   : > { %v2044_v21 = vadd.f32 %v2036_v18, %v2034_v36 }
 0xd71   : > { %v2038_v25 = vrot.slane %v2037_v26, 4 }
 0xd72   : > { %v2045_v19 = vrot.slane %v2044_v21, 4 }
 0xd73   : > { %v2039_v60 = vadd.f32 %v2038_v25, %v2037_v26 }
 0xd74   : > { %v2046_v63 = vadd.f32 %v2045_v19, %v2044_v21 }
 0xd75   : > { %v2040_v9 = vrot.slane %v2039_v60, 2 }
 0xd76   : > { %v2047_v20 = vrot.slane %v2046_v63, 2 }
 0xd77   : > { %v2041_v56 = vadd.f32 %v2040_v9, %v2039_v60 }
 0xd78   : > { %v2048_v28 = vadd.f32 %v2047_v20, %v2046_v63 }
 0xd79   : > { %v2042_v37 = vrot.slane %v2041_v56, 1 }
 0xd7a   : > { %v2049_v22 = vrot.slane %v2048_v28, 1 }
 0xd7b   : > { %v2043_v24 = vadd.f32 %v2042_v37, %v2041_v56 }
 0xd7c   : > { %v2050_v23 = vadd.f32 %v2049_v22, %v2048_v28 }
 0xd7e   : > { %2148 = vmatprep.mubr.f32.mxu0 %v2050_v23 }
 0xd7f   : > { %2149 = vmatmul.mubr.f32.vlgmr.msra.gmra.mrb[6].mxu0 %v2043_v24 }
 0xd80   : > { %2603 = vmatprep.mubr.msk.f32.mxu0 %vm2964_vm10, %v2940_v1  ;;  %2769 = vmatpush3.bf16.msra.mxu0 %v2768_v38  ;;  %v2771_v1 = vpack.c.bf16 %v2241_v39, %v2240_v34 }
 0xd81   : > { %2770 = vmatprep.subr.bf16.mxu0 %v2963_v14 }
 0xd84   : > { %2772 = vmatpush3.bf16.msra.mxu0 %v2771_v1 }
 0xd85   : > { %2773 = vmatprep.subr.bf16.mxu0 %v2963_v14 }
 0xd88   : > { %2775 = vmatpush3.bf16.msra.mxu0 %v2774_v42 }
 0xd89   : > { %2776 = vmatprep.subr.bf16.mxu0 %v2963_v14  ;;  %v2245_v14 = vld [vmem:[%s3938_s13 + $0x38] sm:$0xff] }
 0xd8a   : > { %v2777_v51 = vpack.c.bf16 %v2245_v14, %v2244_v50 }
 0xd8c   : > { %2778 = vmatpush3.bf16.msra.mxu0 %v2777_v51 }
 0xe52   : > { %v2526_v31 = vpop.f32.mrb[6].mxu0 }
 0xe53   : > { %v2527_v44 = vpop.f32.mrb[7].mxu0 }
 0xe54   : > { %v2528_v45 = vadd.f32 %v2527_v44, %v2526_v31 }
 0xe56   : > { %v2151_v46 = vadd.f32 %v2528_v45, %v2083_v43 }
 0xe58   : > { %v2154_v47 = vmax.f32 %v2151_v46, 0.0 }
 0xe5a   : > { %2585 = vmatmul.mubr.msk.f32.vlgmr.msra.gmra.mrb[10].mxu1 %vm1459_vm2, %v2154_v47 }
 0xf2d   : > { %v2233_v53 = vpop.f32.mrb[10].mxu1 }
 0xf2e   : > { %v2234_v54 = vadd.f32 %v2233_v53, %v2163_v52  ;;  %v2586_v32 = vpop.f32.mrb[11].mxu1 }
 0xf30   : > { %v2237_v55 = vmax.f32 %v2234_v54, 0.0 }
 0xf32   : > { %2604 = vmatmul.mubr.msk.f32.vlgmr.msra.gmra.mrb[8].mxu0 %vm1459_vm2, %v2237_v55 }
0x1005   : > { %v2316_v57 = vpop.f32.mrb[8].mxu0 }
0x1006   : > { %v2317_v59 = vadd.f32 %v2316_v57, %v2246_v33  ;;  %v2605_v61 = vpop.f32.mrb[9].mxu0 }
0x1008   : > { %2321 = vst.msk [vmem:[%s595_s1] sm:$0x1] %vm2320_vm3, %v2317_v59 }
0x1009   : > { %2889 = shalt.err (!%p2886_p3)
}
0x100a   : > { %s2890_s24 = scalar_lea.hbm %s3883_s21, 16  ;;  %s2894_s23 = scalar_lea.hbm %s4016_s4, 32 }
0x100b   : > { %p2891_p4 = scmp.ne.s32.totalorder %s3883_s21, %s2890_s24  ;;  %p2895_p9 = scmp.lt.u32.totalorder %s3883_s21, %s4016_s4 }
0x100c   : > { %p2896_p10 = scmp.lt.u32.totalorder %s2894_s23, %s2890_s24  ;;  %p2898_p12 = scmp.lt.u32.totalorder %s2890_s24, %s3883_s21 }
0x100d   : > { %p2892_p7 = pnand %p2891_p4, %p3104_p5 }
0x100e   : > { %p2897_p11 = por %p2896_p10, %p2895_p9 }
0x100f   : > { %p2893_p8 = pneg %p2892_p7 }
0x1010   : > { %p2899_p13 = por %p2898_p12, %p2897_p11 }
0x1012   : > { %p2900_p0 = pnand %p2899_p13, %p2893_p8 }
0x1014   : > { %2903 = shalt.err (!%p2900_p0)
}
0x1015   : > { %2779 = dma.vmem_to_hbm [thread:$0]  (%p3104_p5), %s3885_s14, 16, %s3883_s21, %s2323_s18  }
0x1016 PF: > { %s4017_s26 = sld [smem:[#allocation9_spill]]  ;;  %s4018_s25 = sld [smem:[#allocation7_spill]] }
0x101c   : > { %p2785_p1 = scmp.ge.s32.totalorder %s4017_s26, 2  ;;  %s2355_s28 = sand.u32 1, %s4018_s25  }
0x101d   : > { %s2356_s20 = scalar_lea.sflag [#allocation5], %s2355_s28 }
0x101e   : > { %p2782_p2 = pnand %p2785_p1, %p3108_p6 }
0x1020   : > { %2921 = dma.done.wait (!%p2782_p2), %s2356_s20, 16  }
0x1021   : > { %2923 = vsyncadd (!%p2782_p2), %s2356_s20, 4294967280  ;;  %s4020_s21 = sld [smem:[#allocation11_spill]]  ;;  %s4021_s22 = sld [smem:[#allocation8_spill]] }
0x1022   : > { %s4022_s20 = sld [smem:[#allocation12_spill]]  ;;  %s4023_s0 = smov %s2930_s30 }
0x1027   : > { %p30_p3 = scmp.ge.s32.totalorder %s4020_s21, 4   ;;  %s4024_s30 = smov %s4021_s22 }
0x1029   :  { %32 = sbr.rel (!%p30_p3) target bundleno = 12 (0xc), region = 139 }
0x1030   :  { %2368 = vsyncpa [#allocation5], 1 }
0x1031   :  { %2370 = vsyncpa [#allocation5 + $0x1], 1 }

</bundles_post_ra>
